<compile_context>
chip_gen: v7x
topology: tpu7x:2x2x1
jax: 0.10.0
libtpu: 0.0.40
codegen_flags: <defaults>
</compile_context>

<pallas_src>
import functools
import numpy as np
import jax
import jax.numpy as jnp
from jax.experimental import pallas as pl
from jax.experimental.pallas import tpu as pltpu


def _round_up(x, m):
    return ((x + m - 1) // m) * m


def _split_bf16(v):
    """Split an f32 value into (hi, lo) bf16 parts with v ~= hi + lo (exact split)."""
    hi = v.astype(jnp.bfloat16)
    lo = (v - hi.astype(jnp.float32)).astype(jnp.bfloat16)
    return hi, lo


def _dot_f32_via_bf16x3(w, h):
    """f32 matmul emulated with 3 single-pass bf16 MXU matmuls (bf16x3).

    Guarantees 3 MXU passes on every TPU generation (vs the compiler-default
    f32 emulation, which can be up to 6) while keeping ~2^-16 relative error.
    The dropped lo*lo term contributes ~2^-18 relative.
    """
    w_hi, w_lo = _split_bf16(w)
    h_hi, h_lo = _split_bf16(h)
    acc = jnp.dot(w_hi, h_hi, preferred_element_type=jnp.float32)
    acc = acc + jnp.dot(w_hi, h_lo, preferred_element_type=jnp.float32)
    acc = acc + jnp.dot(w_lo, h_hi, preferred_element_type=jnp.float32)
    return acc


def _siren_kernel(x_ref, *refs, sin_flags, vpu_first_layer, exact_f32):
    """Fused SIREN forward for one column tile (feature-major layout).

    refs = (w0, b0, w1, b1, ..., w_{L-1}, b_{L-1}, out_ref)
    x_ref : (in_f, T)   w_i : (out_f_i, in_f_i)   b_i : (out_f_i, 1)
    omega_i is already folded into (w_i, b_i) for every sine layer, so each
    layer is just  h <- W h + b ;  h <- sin(h) if sin_flags[i].
    """
    out_ref = refs[-1]
    wb = refs[:-1]
    n_layers = len(wb) // 2

    h = x_ref[...].astype(jnp.float32)                 # (in_f, T)
    in_f, t = h.shape

    for i in range(n_layers):
        w = wb[2 * i][...].astype(jnp.float32)         # (out_f, in_f)
        b = wb[2 * i + 1][...].astype(jnp.float32)     # (out_f, 1)
        if i == 0 and vpu_first_layer:
            # K == in_features is tiny (3): unrolled VPU outer-product FMAs,
            # exact f32 (important: the first layer carries the full omega=30
            # scale, so it gets no bf16 rounding at all).
            acc = jnp.broadcast_to(b, (w.shape[0], t))
            for k in range(in_f):
                acc = acc + w[:, k:k + 1] * h[k:k + 1, :]
            h = acc
        elif exact_f32:
            h = jnp.dot(w, h, precision=jax.lax.Precision.HIGHEST,
                        preferred_element_type=jnp.float32) + b
        else:
            h = _dot_f32_via_bf16x3(w, h) + b
        if sin_flags[i]:
            h = jnp.sin(h)

    out_ref[...] = h.astype(out_ref.dtype)


def siren_mask_forward(coords, weights, biases, omegas, outermost_linear,
                       tile_cols=4096, feature_major_output=False,
                       exact_f32_matmul=False, vmem_limit_bytes=None):
    """coords: (..., in_features).  weights[i]: (out_f, in_f) (PyTorch layout).

    Returns (..., out_features) (or (out_features, N) if feature_major_output).
    tile_cols = coordinate points per grid step (multiple of 128); 2048-8192
    amortizes per-step pipeline overhead while activations stay far below the
    VMEM limits on v5e/v6e/v7x.
    """
    orig_shape = coords.shape
    in_f = orig_shape[-1]
    x = coords.reshape(-1, in_f)
    n = x.shape[0]
    n_layers = len(weights)
    out_f = weights[-1].shape[0]

    # Which layers are followed by a sine (everything except an outermost Linear).
    sin_flags = tuple(not (i == n_layers - 1 and outermost_linear)
                      for i in range(n_layers))

    # Fold omega into the parameters: sin(omega*(W h + b)) == sin(W' h + b')
    # with W' = omega*W, b' = omega*b -> drops the per-tile omega multiply.
    w_f, b_f = [], []
    for i, (w, b) in enumerate(zip(weights, biases)):
        s = float(omegas[i]) if sin_flags[i] else 1.0
        w_f.append(w.astype(jnp.float32) * s)
        b_f.append((b.astype(jnp.float32) * s).reshape(-1, 1))

    # Feature-major inside the kernel: points on the lane axis -> lane-dense
    # compute and a lane-dense (out_f, tile) store.
    # NOTE: this x.T and the final out_t.T are each one extra XLA HBM pass;
    # pass feature_major_output=True to skip the output transpose when the
    # consumer can consume (out_f, N) directly.
    # TODO(synk): an in-kernel (tile, in_f) -> (in_f, tile) transpose would also
    # remove the input pass, but skinny (tile, 3) transposes are not a robust
    # Mosaic lowering path, so the input transpose stays in the wrapper.
    x_t = x.T                                          # (in_f, n)

    tile_cols = _round_up(max(int(tile_cols), 128), 128)
    # Cap the tile so the grid has >= 2 steps: with dimension_semantics
    # ("parallel",) both v7x TensorCores get work; on 1-TC chips the extra
    # grid step costs only ~0.35 us.
    half = _round_up((n + 1) // 2, 128)
    tile = max(128, min(tile_cols, half))
    grid = (pl.cdiv(n, tile),)   # ragged tail handled by Pallas block masking

    in_specs = [pl.BlockSpec((in_f, tile), lambda i: (0, i))]
    inputs = [x_t]
    for w, b in zip(w_f, b_f):
        in_specs.append(pl.BlockSpec(w.shape, lambda i: (0, 0)))
        in_specs.append(pl.BlockSpec(b.shape, lambda i: (0, 0)))
        inputs.extend([w, b])

    # Advisory cost estimate for XLA scheduling around the custom call.
    flops = 0
    transcendentals = 0
    for i, w in enumerate(weights):
        of, kf = w.shape
        flops += 2 * n * of * kf + n * of
        if sin_flags[i]:
            transcendentals += n * of
    bytes_accessed = 4 * (n * in_f + n * out_f
                          + sum(int(w.size) + int(b.size)
                                for w, b in zip(weights, biases)))

    # VMEM budget guard: only kicks in when sweeping tile_cols to 8K-16K+
    # (relevant on v5e, 16 MiB default scoped VMEM); the default tile is far
    # below any limit on v5e/v6e/v7x.
    if vmem_limit_bytes is None:
        max_rows = max(in_f, out_f, *(w.shape[0] for w in weights))
        act_bytes = 4 * tile * (2 * in_f + 2 * out_f + 6 * max_rows)
        par_bytes = sum(8 * (_round_up(w.shape[0], 8) * _round_up(w.shape[1], 128)
                             + 8 * 128) for w in weights)
        need = act_bytes + par_bytes
        if need > 12 * 2**20:
            vmem_limit_bytes = min(int(need * 3 // 2), 100 * 2**20)

    kernel = functools.partial(
        _siren_kernel,
        sin_flags=sin_flags,
        vpu_first_layer=(in_f <= 8),   # guard: fall back to MXU if in_f large
        exact_f32=bool(exact_f32_matmul))

    out_t = pl.pallas_call(
        kernel,
        out_shape=jax.ShapeDtypeStruct((out_f, n), jnp.float32),
        grid_spec=pltpu.PrefetchScalarGridSpec(
            num_scalar_prefetch=0,
            grid=grid,
            in_specs=in_specs,
            out_specs=pl.BlockSpec((out_f, tile), lambda i: (0, i)),
        ),
        compiler_params=pltpu.CompilerParams(
            dimension_semantics=("parallel",),
            vmem_limit_bytes=vmem_limit_bytes),
        cost_estimate=pl.CostEstimate(
            flops=int(flops),
            transcendentals=int(transcendentals),
            bytes_accessed=int(bytes_accessed)),
    )(*inputs)

    if feature_major_output:
        return out_t                                   # (out_f, n)
    return out_t.T.reshape(*orig_shape[:-1], out_f)


def init_siren_params(key, in_features, hidden_features, hidden_layers,
                      out_features, outermost_linear, first_omega_0,
                      hidden_omega_0):
    """Deterministic init matching Siren_mask shapes / init ranges.

    Weights are produced in PyTorch nn.Linear layout: (out_features, in_features).
    """
    dims = [in_features] + list(hidden_features)
    layer_dims = [(dims[i], dims[i + 1]) for i in range(hidden_layers + 1)]
    layer_dims.append((hidden_features[-1], out_features))

    weights, biases, omegas = [], [], []
    for li, (fan_in, fan_out) in enumerate(layer_dims):
        key, kw, kb = jax.random.split(key, 3)
        if li == 0:
            bound_w = 1.0 / fan_in
            omegas.append(first_omega_0)
        else:
            bound_w = np.sqrt(6.0 / fan_in) / hidden_omega_0
            omegas.append(hidden_omega_0)
        # nn.Linear default bias init: U(-1/sqrt(fan_in), 1/sqrt(fan_in))
        bound_b = 1.0 / np.sqrt(fan_in)
        w = jax.random.uniform(kw, (fan_out, fan_in), jnp.float32,
                               -bound_w, bound_w)
        b = jax.random.uniform(kb, (fan_out,), jnp.float32,
                               -bound_b, bound_b)
        weights.append(w)
        biases.append(b)
    return weights, biases, omegas


def siren_reference(coords, weights, biases, omegas, outermost_linear):
    h = coords.astype(jnp.float32)
    n_layers = len(weights)
    for i, (w, b) in enumerate(zip(weights, biases)):
        h = jnp.dot(h, w.T, precision=jax.lax.Precision.HIGHEST) + b
        if not (i == n_layers - 1 and outermost_linear):
            h = jnp.sin(omegas[i] * h)
    return h


if __name__ == "__main__":
    # Config consistent with the module:
    # Siren_mask(in_features=3, hidden_features=[32, 32, 32], hidden_layers=2,
    #            out_features=4, outermost_linear=True)
    in_features = 3
    hidden_features = [32, 32, 32]
    hidden_layers = 2
    out_features = 4
    outermost_linear = True
    first_omega_0 = 30.0
    hidden_omega_0 = 30.0

    key = jax.random.PRNGKey(0)
    key, kc = jax.random.split(key)
    # coords: batch=2, 128 coordinate points each, 3 features (x, y, t)
    coords = jax.random.uniform(kc, (2, 128, in_features), jnp.float32,
                                -1.0, 1.0)

    weights, biases, omegas = init_siren_params(
        key, in_features, hidden_features, hidden_layers, out_features,
        outermost_linear, first_omega_0, hidden_omega_0)

    out = siren_mask_forward(coords, weights, biases, omegas,
                             outermost_linear)
    out = jax.block_until_ready(out)

    ref = siren_reference(coords, weights, biases, omegas, outermost_linear)
    assert out.shape == (2, 128, out_features), out.shape
    max_err = float(jnp.max(jnp.abs(out - ref)))
    # Layer 0 is exact f32 (VPU FMAs); hidden/final layers use explicit bf16x3
    # (error ~2^-16 relative, attenuated by the small final-layer weights),
    # so 1e-4 covers it comfortably vs the HIGHEST-precision reference.
    assert jnp.allclose(out, ref, atol=1e-4, rtol=1e-4), max_err

    print("KERNEL_OK")
</pallas_src>

<mosaic_0001>
module attributes {stable_mosaic.version = 11 : i64} {
  func.func @_siren_kernel(%arg0: i32, %arg1: memref<3x128xf32, #tpu.memory_space<vmem>>, %arg2: memref<32x3xf32, #tpu.memory_space<vmem>>, %arg3: memref<32x1xf32, #tpu.memory_space<vmem>>, %arg4: memref<32x32xf32, #tpu.memory_space<vmem>>, %arg5: memref<32x1xf32, #tpu.memory_space<vmem>>, %arg6: memref<32x32xf32, #tpu.memory_space<vmem>>, %arg7: memref<32x1xf32, #tpu.memory_space<vmem>>, %arg8: memref<4x32xf32, #tpu.memory_space<vmem>>, %arg9: memref<4x1xf32, #tpu.memory_space<vmem>>, %arg10: memref<4x128xf32, #tpu.memory_space<vmem>>) attributes {dimension_semantics = [#tpu.dimension_semantics<parallel>], iteration_bounds = array<i64: 2>, scalar_prefetch = 0 : i64, scratch_operands = 0 : i64, tpu.core_type = #tpu.core_type<tc>, window_params = [{transform_indices = @transform_0, window_bounds = array<i64: 3, 128>}, {pipeline_mode = #tpu.pipeline_mode<synchronous>, transform_indices = @transform_1, window_bounds = array<i64: 32, 3>}, {pipeline_mode = #tpu.pipeline_mode<synchronous>, transform_indices = @transform_2, window_bounds = array<i64: 32, 1>}, {pipeline_mode = #tpu.pipeline_mode<synchronous>, transform_indices = @transform_3, window_bounds = array<i64: 32, 32>}, {pipeline_mode = #tpu.pipeline_mode<synchronous>, transform_indices = @transform_4, window_bounds = array<i64: 32, 1>}, {pipeline_mode = #tpu.pipeline_mode<synchronous>, transform_indices = @transform_5, window_bounds = array<i64: 32, 32>}, {pipeline_mode = #tpu.pipeline_mode<synchronous>, transform_indices = @transform_6, window_bounds = array<i64: 32, 1>}, {pipeline_mode = #tpu.pipeline_mode<synchronous>, transform_indices = @transform_7, window_bounds = array<i64: 4, 32>}, {pipeline_mode = #tpu.pipeline_mode<synchronous>, transform_indices = @transform_8, window_bounds = array<i64: 4, 1>}, {transform_indices = @transform_9, window_bounds = array<i64: 4, 128>}]} {
    %c0 = arith.constant 0 : index
    %c0_0 = arith.constant 0 : index
    %0 = vector.load %arg1[%c0, %c0_0] : memref<3x128xf32, #tpu.memory_space<vmem>>, vector<3x128xf32>
    %c0_1 = arith.constant 0 : index
    %c0_2 = arith.constant 0 : index
    %1 = vector.load %arg2[%c0_1, %c0_2] : memref<32x3xf32, #tpu.memory_space<vmem>>, vector<32x3xf32>
    %c0_3 = arith.constant 0 : index
    %c0_4 = arith.constant 0 : index
    %2 = vector.load %arg3[%c0_3, %c0_4] : memref<32x1xf32, #tpu.memory_space<vmem>>, vector<32x1xf32>
    %3 = vector.shape_cast %2 : vector<32x1xf32> to vector<32x1xf32>
    %4 = vector.broadcast %3 : vector<32x1xf32> to vector<32x128xf32>
    %5 = vector.extract_strided_slice %1 {offsets = [0, 0], sizes = [32, 1], strides = [1, 1]} : vector<32x3xf32> to vector<32x1xf32>
    %6 = vector.extract_strided_slice %0 {offsets = [0, 0], sizes = [1, 128], strides = [1, 1]} : vector<3x128xf32> to vector<1x128xf32>
    %7 = vector.broadcast %5 : vector<32x1xf32> to vector<32x128xf32>
    %8 = vector.broadcast %6 : vector<1x128xf32> to vector<32x128xf32>
    %9 = arith.mulf %7, %8 : vector<32x128xf32>
    %10 = arith.addf %4, %9 : vector<32x128xf32>
    %11 = vector.extract_strided_slice %1 {offsets = [0, 1], sizes = [32, 1], strides = [1, 1]} : vector<32x3xf32> to vector<32x1xf32>
    %12 = vector.extract_strided_slice %0 {offsets = [1, 0], sizes = [1, 128], strides = [1, 1]} : vector<3x128xf32> to vector<1x128xf32>
    %13 = vector.broadcast %11 : vector<32x1xf32> to vector<32x128xf32>
    %14 = vector.broadcast %12 : vector<1x128xf32> to vector<32x128xf32>
    %15 = arith.mulf %13, %14 : vector<32x128xf32>
    %16 = arith.addf %10, %15 : vector<32x128xf32>
    %17 = vector.extract_strided_slice %1 {offsets = [0, 2], sizes = [32, 1], strides = [1, 1]} : vector<32x3xf32> to vector<32x1xf32>
    %18 = vector.extract_strided_slice %0 {offsets = [2, 0], sizes = [1, 128], strides = [1, 1]} : vector<3x128xf32> to vector<1x128xf32>
    %19 = vector.broadcast %17 : vector<32x1xf32> to vector<32x128xf32>
    %20 = vector.broadcast %18 : vector<1x128xf32> to vector<32x128xf32>
    %21 = arith.mulf %19, %20 : vector<32x128xf32>
    %22 = arith.addf %16, %21 : vector<32x128xf32>
    %23 = math.sin %22 : vector<32x128xf32>
    %c0_5 = arith.constant 0 : index
    %c0_6 = arith.constant 0 : index
    %24 = vector.load %arg4[%c0_5, %c0_6] : memref<32x32xf32, #tpu.memory_space<vmem>>, vector<32x32xf32>
    %c0_7 = arith.constant 0 : index
    %c0_8 = arith.constant 0 : index
    %25 = vector.load %arg5[%c0_7, %c0_8] : memref<32x1xf32, #tpu.memory_space<vmem>>, vector<32x1xf32>
    %26 = arith.truncf %24 : vector<32x32xf32> to vector<32x32xbf16>
    %27 = arith.extf %26 : vector<32x32xbf16> to vector<32x32xf32>
    %28 = arith.subf %24, %27 : vector<32x32xf32>
    %29 = arith.truncf %28 : vector<32x32xf32> to vector<32x32xbf16>
    %30 = arith.truncf %23 : vector<32x128xf32> to vector<32x128xbf16>
    %31 = arith.extf %30 : vector<32x128xbf16> to vector<32x128xf32>
    %32 = arith.subf %23, %31 : vector<32x128xf32>
    %33 = arith.truncf %32 : vector<32x128xf32> to vector<32x128xbf16>
    %cst = arith.constant dense<0.000000e+00> : vector<32x128xf32>
    %34 = tpu.matmul %26, %30, %cst {dimension_numbers = #tpu.dot_dimension_numbers<[1], [0], [0], [1], [0, 0, 1, 1], [], []>} : vector<32x32xbf16>, vector<32x128xbf16>, vector<32x128xf32> -> vector<32x128xf32>
    %cst_9 = arith.constant dense<0.000000e+00> : vector<32x128xf32>
    %35 = tpu.matmul %26, %33, %cst_9 {dimension_numbers = #tpu.dot_dimension_numbers<[1], [0], [0], [1], [0, 0, 1, 1], [], []>} : vector<32x32xbf16>, vector<32x128xbf16>, vector<32x128xf32> -> vector<32x128xf32>
    %36 = arith.addf %34, %35 : vector<32x128xf32>
    %cst_10 = arith.constant dense<0.000000e+00> : vector<32x128xf32>
    %37 = tpu.matmul %29, %30, %cst_10 {dimension_numbers = #tpu.dot_dimension_numbers<[1], [0], [0], [1], [0, 0, 1, 1], [], []>} : vector<32x32xbf16>, vector<32x128xbf16>, vector<32x128xf32> -> vector<32x128xf32>
    %38 = arith.addf %36, %37 : vector<32x128xf32>
    %39 = vector.broadcast %25 : vector<32x1xf32> to vector<32x128xf32>
    %40 = arith.addf %38, %39 : vector<32x128xf32>
    %41 = math.sin %40 : vector<32x128xf32>
    %c0_11 = arith.constant 0 : index
    %c0_12 = arith.constant 0 : index
    %42 = vector.load %arg6[%c0_11, %c0_12] : memref<32x32xf32, #tpu.memory_space<vmem>>, vector<32x32xf32>
    %c0_13 = arith.constant 0 : index
    %c0_14 = arith.constant 0 : index
    %43 = vector.load %arg7[%c0_13, %c0_14] : memref<32x1xf32, #tpu.memory_space<vmem>>, vector<32x1xf32>
    %44 = arith.truncf %42 : vector<32x32xf32> to vector<32x32xbf16>
    %45 = arith.extf %44 : vector<32x32xbf16> to vector<32x32xf32>
    %46 = arith.subf %42, %45 : vector<32x32xf32>
    %47 = arith.truncf %46 : vector<32x32xf32> to vector<32x32xbf16>
    %48 = arith.truncf %41 : vector<32x128xf32> to vector<32x128xbf16>
    %49 = arith.extf %48 : vector<32x128xbf16> to vector<32x128xf32>
    %50 = arith.subf %41, %49 : vector<32x128xf32>
    %51 = arith.truncf %50 : vector<32x128xf32> to vector<32x128xbf16>
    %cst_15 = arith.constant dense<0.000000e+00> : vector<32x128xf32>
    %52 = tpu.matmul %44, %48, %cst_15 {dimension_numbers = #tpu.dot_dimension_numbers<[1], [0], [0], [1], [0, 0, 1, 1], [], []>} : vector<32x32xbf16>, vector<32x128xbf16>, vector<32x128xf32> -> vector<32x128xf32>
    %cst_16 = arith.constant dense<0.000000e+00> : vector<32x128xf32>
    %53 = tpu.matmul %44, %51, %cst_16 {dimension_numbers = #tpu.dot_dimension_numbers<[1], [0], [0], [1], [0, 0, 1, 1], [], []>} : vector<32x32xbf16>, vector<32x128xbf16>, vector<32x128xf32> -> vector<32x128xf32>
    %54 = arith.addf %52, %53 : vector<32x128xf32>
    %cst_17 = arith.constant dense<0.000000e+00> : vector<32x128xf32>
    %55 = tpu.matmul %47, %48, %cst_17 {dimension_numbers = #tpu.dot_dimension_numbers<[1], [0], [0], [1], [0, 0, 1, 1], [], []>} : vector<32x32xbf16>, vector<32x128xbf16>, vector<32x128xf32> -> vector<32x128xf32>
    %56 = arith.addf %54, %55 : vector<32x128xf32>
    %57 = vector.broadcast %43 : vector<32x1xf32> to vector<32x128xf32>
    %58 = arith.addf %56, %57 : vector<32x128xf32>
    %59 = math.sin %58 : vector<32x128xf32>
    %c0_18 = arith.constant 0 : index
    %c0_19 = arith.constant 0 : index
    %60 = vector.load %arg8[%c0_18, %c0_19] : memref<4x32xf32, #tpu.memory_space<vmem>>, vector<4x32xf32>
    %c0_20 = arith.constant 0 : index
    %c0_21 = arith.constant 0 : index
    %61 = vector.load %arg9[%c0_20, %c0_21] : memref<4x1xf32, #tpu.memory_space<vmem>>, vector<4x1xf32>
    %62 = arith.truncf %60 : vector<4x32xf32> to vector<4x32xbf16>
    %63 = arith.extf %62 : vector<4x32xbf16> to vector<4x32xf32>
    %64 = arith.subf %60, %63 : vector<4x32xf32>
    %65 = arith.truncf %64 : vector<4x32xf32> to vector<4x32xbf16>
    %66 = arith.truncf %59 : vector<32x128xf32> to vector<32x128xbf16>
    %67 = arith.extf %66 : vector<32x128xbf16> to vector<32x128xf32>
    %68 = arith.subf %59, %67 : vector<32x128xf32>
    %69 = arith.truncf %68 : vector<32x128xf32> to vector<32x128xbf16>
    %cst_22 = arith.constant dense<0.000000e+00> : vector<4x128xf32>
    %70 = tpu.matmul %62, %66, %cst_22 {dimension_numbers = #tpu.dot_dimension_numbers<[1], [0], [0], [1], [0, 0, 1, 1], [], []>} : vector<4x32xbf16>, vector<32x128xbf16>, vector<4x128xf32> -> vector<4x128xf32>
    %cst_23 = arith.constant dense<0.000000e+00> : vector<4x128xf32>
    %71 = tpu.matmul %62, %69, %cst_23 {dimension_numbers = #tpu.dot_dimension_numbers<[1], [0], [0], [1], [0, 0, 1, 1], [], []>} : vector<4x32xbf16>, vector<32x128xbf16>, vector<4x128xf32> -> vector<4x128xf32>
    %72 = arith.addf %70, %71 : vector<4x128xf32>
    %cst_24 = arith.constant dense<0.000000e+00> : vector<4x128xf32>
    %73 = tpu.matmul %65, %66, %cst_24 {dimension_numbers = #tpu.dot_dimension_numbers<[1], [0], [0], [1], [0, 0, 1, 1], [], []>} : vector<4x32xbf16>, vector<32x128xbf16>, vector<4x128xf32> -> vector<4x128xf32>
    %74 = arith.addf %72, %73 : vector<4x128xf32>
    %75 = vector.broadcast %61 : vector<4x1xf32> to vector<4x128xf32>
    %76 = arith.addf %74, %75 : vector<4x128xf32>
    %c0_25 = arith.constant 0 : index
    %c0_26 = arith.constant 0 : index
    %77 = vector.load %arg10[%c0_25, %c0_26] : memref<4x128xf32, #tpu.memory_space<vmem>>, vector<4x128xf32>
    tpu.vector_store %arg10[%c0_25, %c0_26], %76 {strides = array<i32>} : memref<4x128xf32, #tpu.memory_space<vmem>>, vector<4x128xf32>,
    return
  }
  func.func @transform_0(%arg0: i32) -> (i32, i32) {
    %c0_i32 = arith.constant 0 : i32
    %c0_i32_0 = arith.constant 0 : i32
    return %c0_i32, %arg0 : i32, i32
  }
  func.func @transform_1(%arg0: i32) -> (i32, i32) {
    %c0_i32 = arith.constant 0 : i32
    %c0_i32_0 = arith.constant 0 : i32
    %c0_i32_1 = arith.constant 0 : i32
    return %c0_i32, %c0_i32_0 : i32, i32
  }
  func.func @transform_2(%arg0: i32) -> (i32, i32) {
    %c0_i32 = arith.constant 0 : i32
    %c0_i32_0 = arith.constant 0 : i32
    %c0_i32_1 = arith.constant 0 : i32
    return %c0_i32, %c0_i32_0 : i32, i32
  }
  func.func @transform_3(%arg0: i32) -> (i32, i32) {
    %c0_i32 = arith.constant 0 : i32
    %c0_i32_0 = arith.constant 0 : i32
    %c0_i32_1 = arith.constant 0 : i32
    return %c0_i32, %c0_i32_0 : i32, i32
  }
  func.func @transform_4(%arg0: i32) -> (i32, i32) {
    %c0_i32 = arith.constant 0 : i32
    %c0_i32_0 = arith.constant 0 : i32
    %c0_i32_1 = arith.constant 0 : i32
    return %c0_i32, %c0_i32_0 : i32, i32
  }
  func.func @transform_5(%arg0: i32) -> (i32, i32) {
    %c0_i32 = arith.constant 0 : i32
    %c0_i32_0 = arith.constant 0 : i32
    %c0_i32_1 = arith.constant 0 : i32
    return %c0_i32, %c0_i32_0 : i32, i32
  }
  func.func @transform_6(%arg0: i32) -> (i32, i32) {
    %c0_i32 = arith.constant 0 : i32
    %c0_i32_0 = arith.constant 0 : i32
    %c0_i32_1 = arith.constant 0 : i32
    return %c0_i32, %c0_i32_0 : i32, i32
  }
  func.func @transform_7(%arg0: i32) -> (i32, i32) {
    %c0_i32 = arith.constant 0 : i32
    %c0_i32_0 = arith.constant 0 : i32
    %c0_i32_1 = arith.constant 0 : i32
    return %c0_i32, %c0_i32_0 : i32, i32
  }
  func.func @transform_8(%arg0: i32) -> (i32, i32) {
    %c0_i32 = arith.constant 0 : i32
    %c0_i32_0 = arith.constant 0 : i32
    %c0_i32_1 = arith.constant 0 : i32
    return %c0_i32, %c0_i32_0 : i32, i32
  }
  func.func @transform_9(%arg0: i32) -> (i32, i32) {
    %c0_i32 = arith.constant 0 : i32
    %c0_i32_0 = arith.constant 0 : i32
    return %c0_i32, %arg0 : i32, i32
  }
}

</mosaic_0001>

<bundles_post_ra>
// kernel: tpu_custom_call.1
= control target key start
LH: loop header
LB: loop body
LE: loop exit
PB: predicated region body
PF: predicated region fallthrough
CT: control target
= control target key end

     0   :  { %14 = vsyncpa [#allocation3], 0  ;;  %s3963_s0 = inlined_call_operand.vmem [shape: f32[3,256], index: 0, kind: input, shape index: {}]   ;;  %s3964_s1 = inlined_call_operand.vmem [shape: f32[32,3], index: 1, kind: input, shape index: {}]   ;;  %s3965_s2 = inlined_call_operand.vmem [shape: f32[32,1], index: 2, kind: input, shape index: {}]   ;;  %s3966_s3 = inlined_call_operand.vmem [shape: f32[32,32], index: 3, kind: input, shape index: {}]   ;;  %s3967_s4 = inlined_call_operand.vmem [shape: f32[32,1], index: 4, kind: input, shape index: {}]   ;;  %s3968_s5 = inlined_call_operand.vmem [shape: f32[32,32], index: 5, kind: input, shape index: {}]   ;;  %s3969_s6 = inlined_call_operand.vmem [shape: f32[32,1], index: 6, kind: input, shape index: {}]   ;;  %s3970_s7 = inlined_call_operand.vmem [shape: f32[4,32], index: 7, kind: input, shape index: {}]   ;;  %s3971_s8 = inlined_call_operand.vmem [shape: f32[4,1], index: 8, kind: input, shape index: {}]   ;;  %s3972_s9 = inlined_call_operand.hbm [shape: f32[4,256], index: 9, kind: output, shape index: {}]  }
   0x1   :  { %16 = vsyncpa [#allocation3 + $0x1], 0  ;;  %s2836_s30 = smov 0   ;;  %s2838_s10 = smov 0  }
   0x2   :  { %s2840_s11 = smov 0   ;;  %s2842_s12 = smov 0  }
   0x3 LB: > { %s2857_s13 = sadd.s32 4294967295, %s2772_s12   ;;  %s2358_s14 = sadd.s32 4294967294, %s2772_s12   ;;  %s2772_s12 = sphi %s2842_s12, %s4000_s12   ;;  %s2768_s11 = sphi %s2840_s11, %s3999_s11   ;;  %s2764_s10 = sphi %s2838_s10, %s3998_s10   ;;  %s2760_s30 = sphi %s2836_s30, %s3997_s30  }
   0x4   : > { %s2861_s15 = sadd.s32 1, %s2772_s12   ;;  %s223_s16 = sadd.s32 1, %s2768_s11 }
   0x5   : > { %s220_s17 = ssub.s32 %s2772_s12, %s2861_s15  ;;  %p233_p0 = scmp.ne.s32.totalorder %s2768_s11, %s2764_s10 }
   0x6   : > { %p221_p1 = scmp.eq.s32.totalorder %s220_s17, 0  ;;  %p234_p2 = scmp.eq.s32.totalorder %s2857_s13, 1 }
   0x7   : > { %p239_p3 = scmp.ne.s32.totalorder %s2764_s10, %s2760_s30  ;;  %p240_p4 = scmp.eq.s32.totalorder %s2358_s14, 1 }
   0x8   : > { %s2872_s18 = scalar_select %p221_p1, %s2768_s11, %s223_s16  }
   0x9   : > { %p2874_p5 = por %p234_p2, %p233_p0  ;;  %p2878_p6 = por %p240_p4, %p239_p3 }
   0xa   : > { %p2361_p7 = scmp.ge.s32.totalorder %s2772_s12, 1  ;;  %p289_p8 = scmp.lt.s32.totalorder %s2772_s12, 3 }
   0xc   : > { %p290_p9 = pnand %p2361_p7, %p289_p8 }
   0xd   : > { %v334_v0 = vld [vmem:[%s3965_s2] sm:$0xff] (!%p290_p9)  ;;  %v2774_v2 = vmov (!%p290_p9), 0   ;;  %v335_v3 = vld [vmem:[%s3965_s2 + $0x8] sm:$0xff] (!%p290_p9)  ;;  %v333_v5 = vld [vmem:[%s3964_s1 + $0x18] sm:$0xff] (!%p290_p9)  ;;  %v2775_v6 = vmov (!%p290_p9), 1   ;;  %v2776_v9 = vmov (!%p290_p9), 2   ;;  %v378_v11 = vlaneseq (!%p290_p9) }
   0xe   : > { %293 = sbr.rel (%p290_p9) target bundleno = 1300 (0x514), region = 56  ;;  %v330_v1 = vld [vmem:[%s3964_s1] sm:$0xff] (!%p290_p9)  ;;  %2651 = vset.pattern.permute.xlu1 (!%p290_p9), %v2774_v2  ;;  %2650 = vset.pattern.permute.xlu0 (!%p290_p9), %v2774_v2  ;;  %v331_v4 = vld [vmem:[%s3964_s1 + $0x8] sm:$0xff] (!%p290_p9)  ;;  %v336_v7 = vld [vmem:[%s3965_s2 + $0x10] sm:$0xff] (!%p290_p9)  ;;  %p324_p10 = scmp.lt.s32.totalorder (!%p290_p9), %s2857_s13, 1  ;;  %vm894_vm11 = vcmask (!%p290_p9), 261120  }
   0xf   : > { %340 = vperm.xlu1 (!%p290_p9), %2651, %v334_v0   ;;  %360 = vperm.xlu0 (!%p290_p9), %2650, %v330_v1   ;;  %v332_v8 = vld [vmem:[%s3964_s1 + $0x10] sm:$0xff] (!%p290_p9)  ;;  %v337_v10 = vld [vmem:[%s3965_s2 + $0x18] sm:$0xff] (!%p290_p9)  ;;  %v379_v14 = vshrl.u32 (!%p290_p9), %v378_v11, 7  ;;  %v2780_v11 = vmov (!%p290_p9), 2102212464   ;;  %s321_s14 = sand.u32 (!%p290_p9), 1, %s2764_s10  }
  0x10   : > { %s2362_s16 = sshll.u32 (!%p290_p9), %s321_s14, 2  ;;  %s2428_s17 = sshll.u32 (!%p290_p9), %s2857_s13, 6 }
  0x11   : > { %v380_v17 = vsub.s32 (!%p290_p9), 0, %v379_v14  ;;  %v408_v22 = vsub.s32 (!%p290_p9), 1, %v379_v14  ;;  %v436_v24 = vsub.s32 (!%p290_p9), 2, %v379_v14  ;;  %s323_s21 = scalar_lea.vmem (!%p290_p9), [#allocation2], %s2362_s16  ;;  %s2785_s27 = smov (!%p290_p9), [#allocation2]  }
  0x12   : > { %s2299_s22 = sshll.u32 (!%p290_p9), %s323_s21, 4  ;;  %s2714_s28 = sshll.u32 (!%p290_p9), %s2785_s27, 4  ;;  %s3923_s22 = int_to_ptr.vmem [resolvable:$true] %s2299_s22  ;;  %s2715_s28 = int_to_ptr.vmem [resolvable:$false] %s2714_s28 }
  0x13   : > { %345 = vperm.xlu1 (!%p290_p9), %2651, %v335_v3   ;;  %365 = vperm.xlu0 (!%p290_p9), %2650, %v331_v4   ;;  %p2717_p0 = scmp.lt.s32.totalorder (!%p290_p9), %s3923_s22, %s2715_s28 }
  0x15   : > { %s325_s25 = scalar_select %p324_p10, %s2857_s13, 1 }
  0x16   : > { %s2286_s13 = scalar_lea.sflag [#allocation3], %s321_s14 }
  0x17   : > { %2652 = vset.pattern.permute.xlu1 %v2775_v6  ;;  %375 = vperm.xlu0 %2650, %v333_v5   ;;  %s2363_s26 = sshll.u32 %s325_s25, 2  ;;  %s3921_s25 = scalar_lea.hbm %s3972_s9, %s2428_s17 }
  0x18   : > { %395 = vperm.xlu1 %2652, %v331_v4   ;;  %s327_s29 = scalar_lea.vmem %s3963_s0, %s2363_s26  ;;  %s2710_s26 = scalar_lea.vmem %s3923_s22, 64 }
  0x19   : > { %v329_v18 = vld [vmem:[%s327_s29] sm:$0x7]  ;;  %p2711_p11 = scmp.ne.s32.totalorder %s3923_s22, %s2710_s26  ;;  %s2716_s29 = scalar_lea.vmem %s2715_s28, 128 }
  0x1a   : > { %v381_v21 = vrot.slane %v329_v18, %v380_v17  ;;  %v409_v27 = vrot.slane %v329_v18, %v408_v22  ;;  %v2915_v28 = vrot.slane %v329_v18, %v436_v24  ;;  %p2718_p1 = scmp.lt.s32.totalorder %s2716_s29, %s2710_s26 }
  0x1b   : > { %350 = vperm.xlu0 %2650, %v336_v7   ;;  %p2712_p12 = pnand %p2711_p11, %p2874_p5 }
  0x1c   : > { %2653 = vset.pattern.permute.xlu1 %v2774_v2  ;;  %p2719_p2 = por %p2718_p1, %p2717_p0 }
  0x1d   : > { %370 = vperm.xlu1 %2653, %v332_v8   ;;  %p2713_p13 = pneg %p2712_p12 }
  0x1f   : > { %2655 = vset.pattern.permute.xlu0 %v2775_v6  ;;  %p2720_p3 = pnand %p2719_p2, %p2713_p13 }
  0x20   : > { %391 = vperm.xlu0 %2655, %v330_v1  }
  0x21   : > { %2654 = vset.pattern.permute.xlu1 %v2776_v9 }
  0x22   : > { %419 = vperm.xlu1 %2654, %v330_v1  }
  0x24   : > { %399 = vperm.xlu0 %2655, %v332_v8  }
  0x26   : > { %423 = vperm.xlu1 %2654, %v331_v4   ;;  %v2777_v4 = vmov 683565275  }
  0x28   : > { %2659 = vset.pattern.permute.xlu0 %v2776_v9 }
  0x29   : > { %431 = vperm.xlu0 %2659, %v333_v5  }
  0x2a   : > { %2656 = vset.pattern.permute.xlu1 %v2774_v2 }
  0x2b   : > { %355 = vperm.xlu1 %2656, %v337_v10  }
  0x2d   : > { %2661 = vset.pattern.permute.xlu0 %v2774_v2 }
  0x2f   : > { %2657 = vset.pattern.permute.xlu1 %v2775_v6  ;;  %v2778_v6 = vmov 2475754826  }
  0x30   : > { %403 = vperm.xlu1 %2657, %v333_v5  }
  0x34   : > { %2658 = vset.pattern.permute.xlu1 %v2776_v9  ;;  %v2779_v9 = vmov 2131351028  }
  0x35   : > { %427 = vperm.xlu1 %2658, %v332_v8  }
  0x39   : > { %2660 = vset.pattern.permute.xlu1 %v2774_v2 }
  0x8e   : > { %v341_v12 = vpop.permute.xlu1 %340  ;;  %v361_v13 = vpop.permute.xlu0 %360 }
  0x8f   : > { %v382_v25 = vmul.f32 %v381_v21, %v361_v13  ;;  %v2781_v13 = vmov 920167782  }
  0x91   : > { %v386_v30 = vadd.f32 %v382_v25, %v341_v12 }
  0x92   : > { %v346_v15 = vpop.permute.xlu1 %345  ;;  %v366_v16 = vpop.permute.xlu0 %365 }
  0x93   : > { %v383_v32 = vmul.f32 %v381_v21, %v366_v16 }
  0x95   : > { %v387_v38 = vadd.f32 %v383_v32, %v346_v15 }
  0x96   : > { %v376_v19 = vpop.permute.xlu0 %375 }
  0x97   : > { %v396_v20 = vpop.permute.xlu1 %395  ;;  %v385_v59 = vmul.f32 %v381_v21, %v376_v19 }
  0x98   : > { %v411_v36 = vmul.f32 %v409_v27, %v396_v20  ;;  %v2782_v20 = vmov 1326507024  }
  0x9a   : > { %v2913_v23 = vpop.permute.xlu0 %350  ;;  %v415_v42 = vadd.f32 %v411_v36, %v387_v38 }
  0x9c   : > { %v371_v26 = vpop.permute.xlu1 %370 }
  0x9d   : > { %v2935_v60 = vmul.f32 %v381_v21, %v371_v26 }
  0x9f   : > { %v392_v29 = vpop.permute.xlu0 %391 }
  0xa0   : > { %v410_v31 = vmul.f32 %v409_v27, %v392_v29 }
  0xa1   : > { %v420_v33 = vpop.permute.xlu1 %419 }
  0xa2   : > { %v414_v34 = vadd.f32 %v410_v31, %v386_v30  ;;  %v438_v35 = vmul.f32 %v2915_v28, %v420_v33 }
  0xa3   : > { %v400_v55 = vpop.permute.xlu0 %399 }
  0xa4   : > { %v2918_v37 = vadd.f32 %v438_v35, %v414_v34  ;;  %v2939_v0 = vmul.f32 %v409_v27, %v400_v55 }
  0xa5   : > { %v424_v39 = vpop.permute.xlu1 %423 }
  0xa6   : > { %v446_v40 = vand.u32 2147483647, %v2918_v37  ;;  %v449_v41 = vand.u32 2139095040, %v2918_v37  ;;  %v439_v43 = vmul.f32 %v2915_v28, %v424_v39  ;;  %vm448_vm13 = vcmp.lt.s32.totalorder %v2918_v37, 0 }
  0xa8   : > { %v450_v44 = vshrl.u32 %v449_v41, 23  ;;  %v453_v45 = vand.u32 8388607, %v446_v40  ;;  %v2925_v46 = vadd.f32 %v439_v43, %v415_v42  ;;  %v432_v34 = vpop.permute.xlu0 %431 }
  0xaa   : > { %v2364_v47 = vadd.s32 4294967169, %v450_v44  ;;  %v2927_v48 = vpop.permute.xlu1 %355  ;;  %v550_v49 = vand.u32 2147483647, %v2925_v46  ;;  %v553_v50 = vand.u32 2139095040, %v2925_v46  ;;  %v454_v52 = vor.u32 8388608, %v453_v45 }
  0xac   : > { %v456_v51 = vadd.s32 1, %v2364_v47  ;;  %v554_v53 = vshrl.u32 %v553_v50, 23  ;;  %v2933_v54 = vand.u32 8388607, %v550_v49  ;;  %v2937_v63 = vshll.u32 %v454_v52, 8 }
  0xad   : > { %v389_v50 = vadd.f32 %v385_v59, %v2927_v48 }
  0xae   : > { %vm457_vm0 = vcmp.gt.s32.totalorder %v456_v51, 0  ;;  %v2368_v57 = vadd.s32 4294967169, %v554_v53  ;;  %v558_v1 = vor.u32 8388608, %v2933_v54 }
  0xaf   : > { %v458_v56 = vsel %vm457_vm0, %v456_v51, 0  ;;  %v404_v58 = vpop.permute.xlu1 %403  ;;  %v441_v51 = vmul.f32 %v2915_v28, %v432_v34 }
  0xb0   : > { %v459_v61 = vshrl.u32 %v458_v56, 5  ;;  %v460_v62 = vand.u32 31, %v458_v56  ;;  %v413_v2 = vmul.f32 %v409_v27, %v404_v58  ;;  %v560_v8 = vadd.s32 1, %v2368_v57 }
  0xb1   : > { %v2976_v58 = vshll.u32 %v558_v1, 8 }
  0xb2   : > { %v461_v3 = vsub.s32 32, %v460_v62  ;;  %v463_v5 = vshll.u32 %v2777_v4, %v460_v62  ;;  %v466_v7 = vshll.u32 %v2778_v6, %v460_v62  ;;  %v469_v10 = vshll.u32 %v2779_v9, %v460_v62 }
  0xb3   : > { %v472_v12 = vshll.u32 %v2780_v11, %v460_v62  ;;  %v475_v14 = vshll.u32 %v2781_v13, %v460_v62  ;;  %vm478_vm1 = vcmp.lt.s32.totalorder %v459_v61, 1  ;;  %vm479_vm2 = vcmp.lt.s32.totalorder %v459_v61, 2 }
  0xb4   : > { %v464_v15 = vshrl.u32 %v2778_v6, %v461_v3  ;;  %v467_v16 = vshrl.u32 %v2779_v9, %v461_v3  ;;  %v470_v17 = vshrl.u32 %v2780_v11, %v461_v3  ;;  %v462_v18 = vshrl.u32 %v2777_v4, %v461_v3 }
  0xb5   : > { %v473_v19 = vshrl.u32 %v2781_v13, %v461_v3  ;;  %v476_v21 = vshrl.u32 %v2782_v20, %v461_v3  ;;  %vm480_vm3 = vcmp.lt.s32.totalorder %v459_v61, 3  ;;  %vm561_vm4 = vcmp.gt.s32.totalorder %v560_v8, 0 }
  0xb6   : > { %v465_v22 = vor.u32 %v464_v15, %v463_v5  ;;  %v468_v24 = vor.u32 %v467_v16, %v466_v7  ;;  %v471_v25 = vor.u32 %v470_v17, %v469_v10  ;;  %vm481_vm5 = vcmp.lt.s32.totalorder %v459_v61, 4 }
  0xb7   : > { %v474_v26 = vor.u32 %v473_v19, %v472_v12  ;;  %v477_v27 = vor.u32 %v476_v21, %v475_v14  ;;  %v562_v29 = vsel %vm561_vm4, %v560_v8, 0  ;;  %v417_v61 = vadd.f32 %v413_v2, %v389_v50 }
  0xb8   : > { %v482_v30 = vsel %vm478_vm1, %v462_v18, %v465_v22  ;;  %v483_v31 = vsel %vm481_vm5, %v471_v25, 2102212464  ;;  %v486_v32 = vsel %vm478_vm1, %v465_v22, %v468_v24  ;;  %v490_v33 = vsel %vm478_vm1, %v468_v24, %v471_v25 }
  0xb9   : > { %v484_v35 = vsel %vm480_vm3, %v468_v24, %v483_v31  ;;  %v487_v36 = vsel %vm481_vm5, %v474_v26, 920167782  ;;  %v491_v38 = vsel %vm481_vm5, %v477_v27, 1326507024  ;;  %v2957_v39 = vshrl.u32 %v562_v29, 5 }
  0xba   : > { %v485_v41 = vsel %vm479_vm2, %v482_v30, %v484_v35  ;;  %v488_v42 = vsel %vm480_vm3, %v471_v25, %v487_v36  ;;  %v492_v43 = vsel %vm480_vm3, %v474_v26, %v491_v38  ;;  %v564_v44 = vand.u32 31, %v562_v29  ;;  %v428_v36 = vpop.permute.xlu1 %427 }
  0xbb   : > { %v489_v45 = vsel %vm479_vm2, %v486_v32, %v488_v42  ;;  %v493_v47 = vsel %vm479_vm2, %v490_v33, %v492_v43  ;;  %v501_v56 = vmul.u32 %v2937_v63, %v485_v41  ;;  %vm582_vm6 = vcmp.lt.s32.totalorder %v2957_v39, 1 }
  0xbc   : > { %v2967_v52 = vmul.u32.u64.low %v2937_v63, %v493_v47  ;;  %v2968_v53 = vmul.u32.u64.high %v2937_v63, %v493_v47, %v2967_v52  ;;  %v2971_v54 = vmul.u32.u64.low %v2937_v63, %v489_v45  ;;  %v2972_v55 = vmul.u32.u64.high %v2937_v63, %v489_v45, %v2971_v54  ;;  %v3027_v45 = vld [vmem:[%s3966_s3 + $0x8] sm:$0xff] }
  0xbd   : > { %v565_v57 = vsub.s32 32, %v564_v44  ;;  %v567_v62 = vshll.u32 %v2777_v4, %v564_v44  ;;  %v570_v48 = vshll.u32 %v2778_v6, %v564_v44  ;;  %v573_v59 = vshll.u32 %v2779_v9, %v564_v44 }
  0xbe   : > { %v576_v63 = vshll.u32 %v2780_v11, %v564_v44  ;;  %vm503_vm7 = vc.u32 %v2968_v53, %v2971_v54  ;;  %v504_v1 = vadd.s32 1, %v2972_v55  ;;  %v579_v8 = vshll.u32 %v2781_v13, %v564_v44  ;;  %v3022_v44 = vld [vmem:[%s3966_s3] sm:$0xff] }
  0xbf   : > { %v568_v3 = vshrl.u32 %v2778_v6, %v565_v57  ;;  %v571_v5 = vshrl.u32 %v2779_v9, %v565_v57  ;;  %v574_v7 = vshrl.u32 %v2780_v11, %v565_v57  ;;  %v577_v2 = vshrl.u32 %v2781_v13, %v565_v57 }
  0xc0   : > { %v580_v15 = vshrl.u32 %v2782_v20, %v565_v57  ;;  %v505_v16 = vsel %vm503_vm7, %v504_v1, %v2972_v55  ;;  %vm584_vm8 = vcmp.lt.s32.totalorder %v2957_v39, 3  ;;  %vm585_vm9 = vcmp.lt.s32.totalorder %v2957_v39, 4 }
  0xc1   : > { %v569_v10 = vor.u32 %v568_v3, %v567_v62  ;;  %v572_v12 = vor.u32 %v571_v5, %v570_v48  ;;  %v575_v14 = vor.u32 %v574_v7, %v573_v59  ;;  %v578_v17 = vor.u32 %v577_v2, %v576_v63 }
  0xc2   : > { %v506_v18 = vadd.s32 %v505_v16, %v501_v56  ;;  %v566_v19 = vshrl.u32 %v2777_v4, %v565_v57  ;;  %v581_v21 = vor.u32 %v580_v15, %v579_v8  ;;  %v3000_v27 = vadd.f32 %v441_v51, %v417_v61 }
  0xc3   : > { %v587_v22 = vsel %vm585_vm9, %v575_v14, 2102212464  ;;  %v590_v24 = vsel %vm582_vm6, %v569_v10, %v572_v12  ;;  %v591_v25 = vsel %vm585_vm9, %v578_v17, 920167782  ;;  %v594_v26 = vsel %vm582_vm6, %v572_v12, %v575_v14 }
  0xc4   : > { %v507_v29 = vadd.s32 536870912, %v506_v18  ;;  %vm583_vm10 = vcmp.lt.s32.totalorder %v2957_v39, 2  ;;  %v592_v30 = vsel %vm584_vm8, %v575_v14, %v591_v25  ;;  %v595_v31 = vsel %vm585_vm9, %v581_v21, 1326507024 }
  0xc5   : > { %v586_v32 = vsel %vm582_vm6, %v566_v19, %v569_v10  ;;  %v588_v33 = vsel %vm584_vm8, %v572_v12, %v587_v22  ;;  %v593_v34 = vsel %vm583_vm10, %v590_v24, %v592_v30  ;;  %v596_v35 = vsel %vm584_vm8, %v578_v17, %v595_v31 }
  0xc6   : > { %v508_v38 = vshrl.u32 %v507_v29, 30  ;;  %v597_v41 = vsel %vm583_vm10, %v594_v26, %v596_v35  ;;  %v3016_v42 = vmul.u32.u64.low %v2976_v58, %v593_v34  ;;  %v3017_v43 = vmul.u32.u64.high %v2976_v58, %v593_v34, %v3016_v42 }
  0xc7   : > { %v388_v47 = vadd.f32 %v2935_v60, %v2913_v23  ;;  %v3032_v50 = vmul.u32.u64.low %v2976_v58, %v597_v41  ;;  %v3033_v51 = vmul.u32.u64.high %v2976_v58, %v597_v41, %v3032_v50  ;;  %v758_v52 = vand.u32 2147483647, %v3000_v27 }
  0xc8   : > { %v509_v55 = vshll.u32 %v508_v38, 30  ;;  %v589_v56 = vsel %vm583_vm10, %v586_v32, %v588_v33  ;;  %v761_v57 = vand.u32 2139095040, %v3000_v27  ;;  %v440_v61 = vmul.f32 %v2915_v28, %v428_v36 }
  0xc9   : > { %v416_v62 = vadd.f32 %v2939_v0, %v388_v47  ;;  %v3043_v48 = vpack.c.bf16 %v3027_v45, %v3022_v44  ;;  %v608_v60 = vadd.s32 1, %v3017_v43  ;;  %v605_v3 = vmul.u32 %v2976_v58, %v589_v56  ;;  %v868_v47 = vld [vmem:[%s3967_s4 + $0x10] sm:$0xff] }
  0xca   : > { %v3045_v23 = vsub.s32 %v506_v18, %v509_v55  ;;  %v762_v59 = vshrl.u32 %v761_v57, 23  ;;  %vm607_vm12 = vc.u32 %v3033_v51, %v3016_v42  ;;  %v765_v39 = vand.u32 8388607, %v758_v52  ;;  %1070 = vperm.xlu0 %2661, %v868_v47  }
  0xcb   : > { %v3052_v28 = vadd.f32 %v440_v61, %v416_v62  ;;  %2468 = vmatprep.mubr.msk.bf16.mxu0 %vm894_vm11, %v3043_v48  ;;  %v609_v5 = vsel %vm607_vm12, %v608_v60, %v3017_v43  ;;  %v532_v10 = vsub.s32 4, %v508_v38  ;;  %v502_v18 = vadd.s32 %v2971_v54, %v2968_v53  ;;  %v866_v54 = vld [vmem:[%s3967_s4] sm:$0xff]  ;;  %v867_v43 = vld [vmem:[%s3967_s4 + $0x8] sm:$0xff] }
  0xcc   : > { %v512_v0 = vsub.s32 0, %v3045_v23  ;;  %v2376_v7 = vadd.s32 4294967169, %v762_v59  ;;  %v610_v63 = vadd.s32 %v609_v5, %v605_v3  ;;  %v766_v14 = vor.u32 8388608, %v765_v39  ;;  %1060 = vperm.xlu1 %2660, %v866_v54   ;;  %v1503_v59 = vld [vmem:[%s3969_s6 + $0x8] sm:$0xff] }
  0xcd   : > { %v654_v1 = vand.u32 2147483647, %v3052_v28  ;;  %v657_v58 = vand.u32 2139095040, %v3052_v28  ;;  %v3071_v25 = vadd.s32 %v3016_v42, %v3033_v51  ;;  %v3075_v29 = vsel %vm448_vm13, %v532_v10, %v508_v38 }
  0xce   : > { %v2365_v2 = vmin.u32 %v512_v0, %v3045_v23  ;;  %v768_v8 = vadd.s32 1, %v2376_v7  ;;  %v611_v12 = vadd.s32 536870912, %v610_v63  ;;  %v3080_v32 = vshll.u32 %v766_v14, 8  ;;  %1700 = vperm.xlu0 %2661, %v1503_v59  }
  0xcf   : > { %v658_v15 = vshrl.u32 %v657_v58, 23  ;;  %v3063_v16 = vand.u32 8388607, %v654_v1  ;;  %vm3120_vm2 = vcmp.le.f32.partialorder %v446_v40, 0.7853982  ;;  %vm552_vm8 = vcmp.lt.s32.totalorder %v2925_v46, 0 }
  0xd0   : > { %v514_v17 = vclz %v2365_v2  ;;  %vm769_vm14 = vcmp.gt.s32.totalorder %v768_v8, 0  ;;  %v3068_v19 = vshrl.u32 %v611_v12, 30  ;;  %1065 = vperm.xlu1 %2660, %v867_v43   ;;  %v869_v2 = vld [vmem:[%s3967_s4 + $0x18] sm:$0xff] }
  0xd1   : > { %v770_v21 = vsel %vm769_vm14, %v768_v8, 0  ;;  %v2372_v22 = vadd.s32 4294967169, %v658_v15  ;;  %v662_v53 = vor.u32 8388608, %v3063_v16  ;;  %vm3207_vm14 = vcmp.le.f32.partialorder %v550_v49, 0.7853982 }
  0xd2   : > { %v2366_v24 = vadd.s32 4294967294, %v514_v17  ;;  %v772_v26 = vand.u32 31, %v770_v21  ;;  %v613_v30 = vshll.u32 %v3068_v19, 30  ;;  %v3078_v31 = vshrl.u32 %v770_v21, 5  ;;  %v1505_v21 = vld [vmem:[%s3969_s6 + $0x18] sm:$0xff] }
  0xd3   : > { %v3087_v35 = vadd.s32 1, %v2372_v22  ;;  %1710 = vperm.xlu0 %2661, %v1505_v21   ;;  %v636_v21 = vsub.s32 4, %v3068_v19 }
  0xd4   : > { %vm2367_vm15 = vcmp.lt.s32.totalorder %v2366_v24, 0  ;;  %v773_v33 = vsub.s32 32, %v772_v26  ;;  %v775_v34 = vshll.u32 %v2777_v4, %v772_v26  ;;  %v3089_v38 = vsub.s32 %v610_v63, %v613_v30  ;;  %1075 = vperm.xlu1 %2660, %v869_v2  }
  0xd5   : > { %v517_v36 = vsel %vm2367_vm15, 0, %v2366_v24  ;;  %v778_v41 = vshll.u32 %v2778_v6, %v772_v26  ;;  %v781_v42 = vshll.u32 %v2779_v9, %v772_v26  ;;  %v784_v56 = vshll.u32 %v2780_v11, %v772_v26 }
  0xd6   : > { %v518_v50 = vsub.s32 32, %v517_v36  ;;  %v519_v51 = vshll.u32 %v3045_v23, %v517_v36  ;;  %v522_v55 = vsub.s32 4294967266, %v517_v36  ;;  %v616_v57 = vsub.s32 0, %v3089_v38 }
  0xd7   : > { %v776_v61 = vshrl.u32 %v2778_v6, %v773_v33  ;;  %v779_v62 = vshrl.u32 %v2779_v9, %v773_v33  ;;  %v782_v60 = vshrl.u32 %v2780_v11, %v773_v33  ;;  %v785_v23 = vshrl.u32 %v2781_v13, %v773_v33 }
  0xd8   : > { %v520_v3 = vshrl.u32 %v502_v18, %v518_v50  ;;  %v523_v39 = vadd.s32 127, %v522_v55  ;;  %v787_v0 = vshll.u32 %v2781_v13, %v772_v26  ;;  %v2369_v5 = vmin.u32 %v616_v57, %v3089_v38 }
  0xd9   : > { %v777_v7 = vor.u32 %v776_v61, %v775_v34  ;;  %v780_v63 = vor.u32 %v779_v62, %v778_v41  ;;  %v783_v58 = vor.u32 %v782_v60, %v781_v42  ;;  %v786_v12 = vor.u32 %v785_v23, %v784_v56  ;;  %v1502_v34 = vld [vmem:[%s3969_s6] sm:$0xff] }
  0xda   : > { %v521_v8 = vor.u32 %v520_v3, %v519_v51  ;;  %v524_v10 = vshll.u32 %v523_v39, 23  ;;  %v788_v14 = vshrl.u32 %v2782_v20, %v773_v33  ;;  %v618_v15 = vclz %v2369_v5  ;;  %1695 = vperm.xlu1 %2660, %v1502_v34   ;;  %v1504_v3 = vld [vmem:[%s3969_s6 + $0x10] sm:$0xff] }
  0xdb   : > { %v774_v17 = vshrl.u32 %v2777_v4, %v773_v33  ;;  %vm790_vm0 = vcmp.lt.s32.totalorder %v3078_v31, 1  ;;  %vm792_vm1 = vcmp.lt.s32.totalorder %v3078_v31, 3  ;;  %vm793_vm3 = vcmp.lt.s32.totalorder %v3078_v31, 4 }
  0xdc   : > { %v525_v22 = vor.u32 4788187, %v524_v10  ;;  %v528_v24 = vcvt.s32.f32 %v521_v8  ;;  %v789_v26 = vor.u32 %v788_v14, %v787_v0  ;;  %v2370_v30 = vadd.s32 4294967294, %v618_v15  ;;  %v2134_v14 = vld [vmem:[%s3971_s8] sm:$0xf] }
  0xdd   : > { %v794_v54 = vsel %vm790_vm0, %v774_v17, %v777_v7  ;;  %v795_v33 = vsel %vm793_vm3, %v783_v58, 2102212464  ;;  %v798_v40 = vsel %vm790_vm0, %v777_v7, %v780_v63  ;;  %v799_v42 = vsel %vm793_vm3, %v786_v12, 920167782 }
  0xde   : > { %v526_v36 = vand.u32 2147483647, %v525_v22  ;;  %v796_v41 = vsel %vm792_vm1, %v780_v63, %v795_v33  ;;  %v802_v43 = vsel %vm790_vm0, %v780_v63, %v783_v58  ;;  %vm2371_vm4 = vcmp.lt.s32.totalorder %v2370_v30, 0  ;;  %1705 = vperm.xlu1 %2660, %v1504_v3  }
  0xdf   : > { %vm791_vm5 = vcmp.lt.s32.totalorder %v3078_v31, 2  ;;  %v800_v47 = vsel %vm792_vm1, %v783_v58, %v799_v42  ;;  %v803_v50 = vsel %vm793_vm3, %v789_v26, 1326507024  ;;  %v621_v55 = vsel %vm2371_vm4, 0, %v2370_v30 }
  0xe0   : > { %v529_v51 = vmul.f32 %v528_v24, %v526_v36  ;;  %v801_v56 = vsel %vm791_vm5, %v798_v40, %v800_v47  ;;  %v804_v57 = vsel %vm792_vm1, %v786_v12, %v803_v50  ;;  %v622_v61 = vsub.s32 32, %v621_v55 }
  0xe1   : > { %v626_v62 = vsub.s32 4294967266, %v621_v55  ;;  %v797_v60 = vsel %vm791_vm5, %v794_v54, %v796_v41  ;;  %v805_v59 = vsel %vm791_vm5, %v802_v43, %v804_v57  ;;  %v623_v23 = vshll.u32 %v3089_v38, %v621_v55 }
  0xe2   : > { %v530_v39 = vxor.u32 2147483648, %v529_v51  ;;  %v3149_v0 = vmul.u32.u64.low %v3080_v32, %v805_v59  ;;  %v3150_v5 = vmul.u32.u64.high %v3080_v32, %v805_v59, %v3149_v0  ;;  %v624_v7 = vshrl.u32 %v3071_v25, %v622_v61  ;;  %2280 = vperm.xlu1 %2660, %v2134_v14  }
  0xe3   : > { %v627_v31 = vadd.s32 127, %v626_v62  ;;  %v3154_v63 = vmul.u32.u64.low %v3080_v32, %v801_v56  ;;  %v3155_v58 = vmul.u32.u64.high %v3080_v32, %v801_v56, %v3154_v63  ;;  %vm665_vm6 = vcmp.gt.s32.totalorder %v3087_v35, 0 }
  0xe4   : > { %v531_v2 = vsel %vm448_vm13, %v530_v39, %v529_v51  ;;  %v535_v38 = vsel %vm3120_vm2, 0, %v3075_v29  ;;  %v625_v8 = vor.u32 %v624_v7, %v623_v23  ;;  %v666_v25 = vsel %vm665_vm6, %v3087_v35, 0 }
  0xe5   : > { %v628_v10 = vshll.u32 %v627_v31, 23  ;;  %v3167_v12 = vshll.u32 %v662_v53, 8  ;;  %v813_v15 = vmul.u32 %v3080_v32, %v797_v60  ;;  %vm815_vm7 = vc.u32 %v3150_v5, %v3154_v63 }
  0xe6   : > { %v668_v17 = vand.u32 31, %v666_v25  ;;  %v816_v35 = vadd.s32 1, %v3155_v58  ;;  %v667_v16 = vshrl.u32 %v666_v25, 5  ;;  %v534_v53 = vsel %vm3120_vm2, %v2918_v37, %v531_v2 }
  0xe7   : > { %v629_v22 = vor.u32 4788187, %v628_v10  ;;  %v632_v24 = vcvt.s32.f32 %v625_v8  ;;  %2662 = vcosq.f32 %v534_v53  ;;  %vm538_vm5 = vweird.f32 %v2918_v37 }
  0xe8   : > { %v669_v26 = vsub.s32 32, %v668_v17  ;;  %v671_v32 = vshll.u32 %v2777_v4, %v668_v17  ;;  %v674_v30 = vshll.u32 %v2778_v6, %v668_v17  ;;  %v817_v33 = vsel %vm815_vm7, %v816_v35, %v3155_v58 }
  0xe9   : > { %v630_v54 = vand.u32 2147483647, %v629_v22  ;;  %v677_v40 = vshll.u32 %v2779_v9, %v668_v17  ;;  %v680_v34 = vshll.u32 %v2780_v11, %v668_v17  ;;  %v818_v36 = vadd.s32 %v817_v33, %v813_v15 }
  0xea   : > { %v672_v41 = vshrl.u32 %v2778_v6, %v669_v26  ;;  %v675_v42 = vshrl.u32 %v2779_v9, %v669_v26  ;;  %v683_v43 = vshll.u32 %v2781_v13, %v668_v17  ;;  %v678_v50 = vshrl.u32 %v2780_v11, %v669_v26 }
  0xeb   : > { %v633_v47 = vmul.f32 %v632_v24, %v630_v54  ;;  %v681_v51 = vshrl.u32 %v2781_v13, %v669_v26  ;;  %v684_v55 = vshrl.u32 %v2782_v20, %v669_v26  ;;  %v819_v56 = vadd.s32 536870912, %v818_v36 }
  0xec   : > { %v673_v57 = vor.u32 %v672_v41, %v671_v32  ;;  %v676_v61 = vor.u32 %v675_v42, %v674_v30  ;;  %v679_v60 = vor.u32 %v678_v50, %v677_v40  ;;  %v670_v23 = vshrl.u32 %v2777_v4, %v669_v26 }
  0xed   : > { %v634_v62 = vxor.u32 2147483648, %v633_v47  ;;  %v682_v59 = vor.u32 %v681_v51, %v680_v34  ;;  %v685_v3 = vor.u32 %v684_v55, %v683_v43  ;;  %v3192_v39 = vshrl.u32 %v819_v56, 30 }
  0xee   : > { %vm686_vm9 = vcmp.lt.s32.totalorder %v667_v16, 1  ;;  %vm689_vm10 = vcmp.lt.s32.totalorder %v667_v16, 4  ;;  %vm687_vm12 = vcmp.lt.s32.totalorder %v667_v16, 2  ;;  %vm688_vm13 = vcmp.lt.s32.totalorder %v667_v16, 3 }
  0xef   : > { %v691_v0 = vsel %vm689_vm10, %v679_v60, 2102212464  ;;  %v694_v7 = vsel %vm686_vm9, %v673_v57, %v676_v61  ;;  %v635_v31 = vsel %vm552_vm8, %v634_v62, %v633_v47  ;;  %v821_v58 = vshll.u32 %v3192_v39, 30 }
  0xf0   : > { %v695_v2 = vsel %vm689_vm10, %v682_v59, 920167782  ;;  %v698_v8 = vsel %vm686_vm9, %v676_v61, %v679_v60  ;;  %v690_v10 = vsel %vm686_vm9, %v670_v23, %v673_v57  ;;  %v699_v14 = vsel %vm689_vm10, %v685_v3, 1326507024 }
  0xf1   : > { %v696_v25 = vsel %vm688_vm13, %v679_v60, %v695_v2  ;;  %2664 = vsinq.f32 %v534_v53  ;;  %v822_v15 = vsub.s32 %v818_v36, %v821_v58  ;;  %v692_v17 = vsel %vm688_vm13, %v676_v61, %v691_v0  ;;  %v2663_v41 = vpop.eup %2662 }
  0xf2   : > { %v697_v22 = vsel %vm687_vm12, %v694_v7, %v696_v25  ;;  %v700_v35 = vsel %vm688_vm13, %v682_v59, %v699_v14  ;;  %v539_v40 = vadd.s32 3, %v535_v38  ;;  %v693_v34 = vsel %vm687_vm12, %v690_v10, %v692_v17 }
  0xf3   : > { %v701_v24 = vsel %vm687_vm12, %v698_v8, %v700_v35  ;;  %v3201_v26 = vmul.u32.u64.low %v3167_v12, %v697_v22  ;;  %v3202_v32 = vmul.u32.u64.high %v3167_v12, %v697_v22, %v3201_v26  ;;  %v824_v54 = vsub.s32 0, %v822_v15 }
  0xf4   : > { %v3212_v53 = vmul.u32.u64.low %v3167_v12, %v701_v24  ;;  %v3213_v33 = vmul.u32.u64.high %v3167_v12, %v701_v24, %v3212_v53  ;;  %v637_v36 = vsel %vm552_vm8, %v636_v21, %v3068_v19  ;;  %v638_v49 = vsel %vm3207_vm14, %v2925_v46, %v635_v31 }
  0xf5   : > { %v2377_v42 = vmin.u32 %v824_v54, %v822_v15  ;;  %v639_v43 = vsel %vm3207_vm14, 0, %v637_v36  ;;  %2666 = vcosq.f32 %v638_v49  ;;  %v712_v18 = vadd.s32 1, %v3202_v32 }
  0xf6   : > { %2668 = vsinq.f32 %v638_v49  ;;  %v709_v38 = vmul.u32 %v3167_v12, %v693_v34  ;;  %vm711_vm15 = vc.u32 %v3213_v33, %v3201_v26  ;;  %v540_v19 = vand.u32 3, %v539_v40 }
  0xf7   : > { %v826_v29 = vclz %v2377_v42  ;;  %v713_v21 = vsel %vm711_vm15, %v712_v18, %v3202_v32  ;;  %v643_v16 = vadd.s32 3, %v639_v43  ;;  %v546_v51 = vxor.u32 2147483648, %v2663_v41 }
  0xf8   : > { %v714_v50 = vadd.s32 %v713_v21, %v709_v38  ;;  %v872_v56 = vunpack.c.l.bf16 %v3043_v48  ;;  %vm542_vm1 = vcmp.eq.s32.totalorder %v540_v19, 0  ;;  %v814_v12 = vadd.s32 %v3154_v63, %v3150_v5 }
  0xf9   : > { %v2378_v47 = vadd.s32 4294967294, %v826_v29  ;;  %vm545_vm2 = vcmp.eq.s32.totalorder %v540_v19, 2  ;;  %v644_v60 = vand.u32 3, %v643_v16  ;;  %vm541_vm3 = vcmp.lt.s32.totalorder %v540_v19, 2 }
  0xfa   : > { %v715_v57 = vadd.s32 536870912, %v714_v50  ;;  %v873_v31 = vunpack.c.h.bf16 %v3043_v48  ;;  %v3240_v58 = vsub.f32 %v3022_v44, %v872_v56  ;;  %vm642_vm8 = vweird.f32 %v2925_v46 }
  0xfb   : > { %v2665_v55 = vpop.eup %2664  ;;  %vm2379_vm0 = vcmp.lt.s32.totalorder %v2378_v47, 0  ;;  %vm649_vm4 = vcmp.eq.s32.totalorder %v644_v60, 2  ;;  %vm646_vm6 = vcmp.eq.s32.totalorder %v644_v60, 0  ;;  %vm645_vm7 = vcmp.lt.s32.totalorder %v644_v60, 2 }
  0xfc   : > { %v543_v61 = vxor.u32 2147483648, %v2665_v55  ;;  %v829_v62 = vsel %vm2379_vm0, 0, %v2378_v47  ;;  %v3236_v23 = vshrl.u32 %v715_v57, 30  ;;  %v547_v0 = vsel %vm545_vm2, %v546_v51, %v2665_v55 }
  0xfd   : > { %v830_v59 = vsub.s32 32, %v829_v62  ;;  %v834_v3 = vsub.s32 4294967266, %v829_v62  ;;  %v831_v8 = vshll.u32 %v822_v15, %v829_v62  ;;  %v3244_v22 = vsub.f32 %v3027_v45, %v873_v31 }
  0xfe   : > { %v544_v7 = vsel %vm542_vm1, %v2663_v41, %v543_v61  ;;  %v717_v5 = vshll.u32 %v3236_v23, 30  ;;  %v710_v51 = vadd.s32 %v3201_v26, %v3213_v33  ;;  %vm760_vm10 = vcmp.lt.s32.totalorder %v3000_v27, 0 }
  0xff   : > { %v2667_v2 = vpop.eup %2666  ;;  %v832_v10 = vshrl.u32 %v814_v12, %v830_v59  ;;  %v835_v25 = vadd.s32 127, %v834_v3  ;;  %v548_v14 = vsel %vm541_vm3, %v544_v7, %v547_v0  ;;  %v880_v15 = vpack.c.bf16 %v3244_v22, %v3240_v58 }
 0x100   : > { %v2669_v63 = vpop.eup %2668  ;;  %v650_v17 = vxor.u32 2147483648, %v2667_v2  ;;  %v718_v32 = vsub.s32 %v714_v50, %v717_v5  ;;  %v549_v34 = vsel %vm538_vm5, nan, %v548_v14  ;;  %vm3261_vm12 = vcmp.le.f32.partialorder %v758_v52, 0.7853982 }
 0x101   : > { %v833_v35 = vor.u32 %v832_v10, %v831_v8  ;;  %v836_v24 = vshll.u32 %v835_v25, 23  ;;  %v647_v30 = vxor.u32 2147483648, %v2669_v63  ;;  %v844_v0 = vsub.s32 4, %v3192_v39 }
 0x102   : > { %v651_v44 = vsel %vm649_vm4, %v650_v17, %v2669_v63  ;;  %v720_v53 = vsub.s32 0, %v718_v32  ;;  %v740_v8 = vsub.s32 4, %v3236_v23  ;;  %vm656_vm13 = vcmp.lt.s32.totalorder %v3052_v28, 0 }
 0x103   : > { %v837_v54 = vor.u32 4788187, %v836_v24  ;;  %v648_v40 = vsel %vm646_vm6, %v2667_v2, %v647_v30  ;;  %v840_v49 = vcvt.s32.f32 %v833_v35  ;;  %v845_v52 = vsel %vm760_vm10, %v844_v0, %v3192_v39 }
 0x104   : > { %v652_v45 = vsel %vm645_vm7, %v648_v40, %v651_v44  ;;  %v2373_v41 = vmin.u32 %v720_v53, %v718_v32  ;;  %vm655_vm14 = vcmp.le.f32.partialorder %v654_v1, 0.7853982  ;;  %v741_v5 = vsel %vm656_vm13, %v740_v8, %v3236_v23 }
 0x105   : > { %v838_v36 = vand.u32 2147483647, %v837_v54  ;;  %v653_v42 = vsel %vm642_vm8, nan, %v652_v45  ;;  %v847_v63 = vsel %vm3261_vm12, 0, %v845_v52  ;;  %v743_v17 = vsel %vm655_vm14, 0, %v741_v5 }
 0x106   : > { %v3250_v43 = vpack.c.bf16 %v653_v42, %v549_v34  ;;  %v722_v18 = vclz %v2373_v41  ;;  %v851_v35 = vadd.s32 3, %v847_v63  ;;  %vm746_vm5 = vweird.f32 %v3052_v28 }
 0x107   : > { %v841_v37 = vmul.f32 %v840_v49, %v838_v36  ;;  %vm850_vm6 = vweird.f32 %v3000_v27 }
 0x108   : > { %v884_v29 = vunpack.c.l.bf16 %v3250_v43  ;;  %v885_v38 = vunpack.c.h.bf16 %v3250_v43  ;;  %v2374_v19 = vadd.s32 4294967294, %v722_v18  ;;  %v852_v30 = vand.u32 3, %v851_v35 }
 0x109   : > { %v842_v47 = vxor.u32 2147483648, %v841_v37 }
 0x10a   : > { %v888_v21 = vsub.f32 %v549_v34, %v884_v29  ;;  %v889_v16 = vsub.f32 %v653_v42, %v885_v38  ;;  %vm2375_vm9 = vcmp.lt.s32.totalorder %v2374_v19, 0  ;;  %vm854_vm15 = vcmp.eq.s32.totalorder %v852_v30, 0 }
 0x10b   : > { %v725_v50 = vsel %vm2375_vm9, 0, %v2374_v19  ;;  %v843_v57 = vsel %vm760_vm10, %v842_v47, %v841_v37  ;;  %vm857_vm0 = vcmp.eq.s32.totalorder %v852_v30, 2  ;;  %vm853_vm2 = vcmp.lt.s32.totalorder %v852_v30, 2 }
 0x10c   : > { %v892_v46 = vpack.c.bf16 %v889_v16, %v888_v21  ;;  %v726_v55 = vsub.s32 32, %v725_v50  ;;  %v730_v56 = vsub.s32 4294967266, %v725_v50  ;;  %v727_v61 = vshll.u32 %v718_v32, %v725_v50  ;;  %v864_v50 = vld [vmem:[%s3966_s3 + $0x10] sm:$0xff] }
 0x10d   : > { %v846_v33 = vsel %vm3261_vm12, %v3000_v27, %v843_v57  ;;  %v747_v32 = vadd.s32 3, %v743_v17 }
 0x10e   : > { %2464 = vmatprep.subr.bf16.mxu0 %v892_v46  ;;  %v728_v12 = vshrl.u32 %v710_v51, %v726_v55  ;;  %v731_v62 = vadd.s32 127, %v730_v56  ;;  %2670 = vcosq.f32 %v846_v33 }
 0x10f   : > { %2465 = vmatpush3.bf16.msra.mxu0 %v892_v46  ;;  %2672 = vsinq.f32 %v846_v33  ;;  %v748_v53 = vand.u32 3, %v747_v32  ;;  %v865_v46 = vld [vmem:[%s3966_s3 + $0x18] sm:$0xff] }
 0x110   : > { %v729_v59 = vor.u32 %v728_v12, %v727_v61  ;;  %v732_v26 = vshll.u32 %v731_v62, 23 }
 0x111   : > { %vm753_vm1 = vcmp.eq.s32.totalorder %v748_v53, 2  ;;  %vm750_vm3 = vcmp.eq.s32.totalorder %v748_v53, 0  ;;  %vm749_vm4 = vcmp.lt.s32.totalorder %v748_v53, 2 }
 0x112   : > { %v733_v3 = vor.u32 4788187, %v732_v26  ;;  %v736_v31 = vcvt.s32.f32 %v729_v59 }
 0x114   : > { %v734_v7 = vand.u32 2147483647, %v733_v3 }
 0x116   : > { %v737_v2 = vmul.f32 %v736_v31, %v734_v7 }
 0x118   : > { %v738_v10 = vxor.u32 2147483648, %v737_v2  ;;  %v2671_v24 = vpop.eup %2670 }
 0x119   : > { %v2673_v39 = vpop.eup %2672  ;;  %v858_v54 = vxor.u32 2147483648, %v2671_v24 }
 0x11a   : > { %v739_v25 = vsel %vm656_vm13, %v738_v10, %v737_v2  ;;  %v855_v44 = vxor.u32 2147483648, %v2673_v39 }
 0x11b   : > { %v742_v14 = vsel %vm655_vm14, %v3052_v28, %v739_v25  ;;  %v859_v40 = vsel %vm857_vm0, %v858_v54, %v2673_v39  ;;  %v871_v28 = vpack.c.bf16 %v865_v46, %v864_v50 }
 0x11c   : > { %2674 = vcosq.f32 %v742_v14  ;;  %v856_v23 = vsel %vm854_vm15, %v2671_v24, %v855_v44 }
 0x11d   : > { %2676 = vsinq.f32 %v742_v14  ;;  %v860_v41 = vsel %vm853_vm2, %v856_v23, %v859_v40  ;;  %v874_v27 = vunpack.c.l.bf16 %v871_v28  ;;  %v875_v55 = vunpack.c.h.bf16 %v871_v28 }
 0x11e   : > { %v861_v29 = vsel %vm850_vm6, nan, %v860_v41 }
 0x11f   : > { %v878_v56 = vsub.f32 %v864_v50, %v874_v27  ;;  %v879_v57 = vsub.f32 %v865_v46, %v875_v55 }
 0x126   : > { %v2675_v1 = vpop.eup %2674 }
 0x127   : > { %v2677_v34 = vpop.eup %2676  ;;  %v754_v45 = vxor.u32 2147483648, %v2675_v1 }
 0x128   : > { %v751_v36 = vxor.u32 2147483648, %v2677_v34 }
 0x129   : > { %v755_v49 = vsel %vm753_vm1, %v754_v45, %v2677_v34 }
 0x12a   : > { %v752_v42 = vsel %vm750_vm3, %v2675_v1, %v751_v36 }
 0x12b   : > { %v756_v37 = vsel %vm749_vm4, %v752_v42, %v755_v49 }
 0x12c   : > { %v757_v18 = vsel %vm746_vm5, nan, %v756_v37 }
 0x12d   : > { %v883_v38 = vpack.c.bf16 %v861_v29, %v757_v18 }
 0x12f   : > { %v886_v19 = vunpack.c.l.bf16 %v883_v38  ;;  %v887_v21 = vunpack.c.h.bf16 %v883_v38 }
 0x131   : > { %v890_v16 = vsub.f32 %v757_v18, %v886_v19  ;;  %v891_v47 = vsub.f32 %v861_v29, %v887_v21 }
 0x133   : > { %v893_v51 = vpack.c.bf16 %v891_v47, %v890_v16 }
 0x135   : > { %2466 = vmatprep.subr.bf16.mxu0 %v893_v51 }
 0x136   : > { %2467 = vmatpush3.bf16.msra.mxu0 %v893_v51 }
 0x137   : > { %2472 = vmatprep.subr.bf16.mxu0 %v3250_v43 }
 0x139   : > { %2469 = vmatmul.mubr.msk.bf16.vlgmr.msra.gmra.mrb[0].mxu0 %vm894_vm11, %v871_v28 }
 0x13a   : > { %2473 = vmatpush3.bf16.msra.mxu0 %v3250_v43  ;;  %2476 = vmatprep.mubr.msk.bf16.mxu0 %vm894_vm11, %v3043_v48  ;;  %v881_v48 = vpack.c.bf16 %v879_v57, %v878_v56 }
 0x13b   : > { %2474 = vmatprep.subr.bf16.mxu0 %v883_v38 }
 0x13e   : > { %2475 = vmatpush3.bf16.msra.mxu0 %v883_v38 }
 0x13f   : > { %2480 = vmatprep.subr.bf16.mxu0 %v3250_v43 }
 0x145   : > { %2477 = vmatmul.mubr.msk.bf16.vlgmr.msra.gmra.mrb[0].mxu0 %vm894_vm11, %v871_v28 }
 0x146   : > { %2481 = vmatpush3.bf16.msra.mxu0 %v3250_v43  ;;  %2484 = vmatprep.mubr.msk.bf16.mxu0 %vm894_vm11, %v880_v15 }
 0x147   : > { %2482 = vmatprep.subr.bf16.mxu0 %v883_v38 }
 0x149   : > { %v1071_v62 = vpop.permute.xlu0 %1070 }
 0x14a   : > { %2483 = vmatpush3.bf16.msra.mxu0 %v883_v38 }
 0x14b   : > { %v1061_v61 = vpop.permute.xlu1 %1060 }
 0x14f   : > { %v1066_v12 = vpop.permute.xlu1 %1065 }
 0x151   : > { %2485 = vmatmul.mubr.msk.bf16.vlgmr.msra.gmra.mrb[0].mxu0 %vm894_vm11, %v881_v48 }
 0x153   : > { %v1076_v43 = vpop.permute.xlu1 %1075 }
 0x224   : > { %v2486_v60 = vpop.f32.mrb[0].mxu0 }
 0x225   : > { %v3301_v59 = vadd.f32 %v2486_v60, %v1071_v62  ;;  %v1039_v26 = vpop.f32.mrb[1].mxu0 }
 0x226   : > { %v3303_v33 = vadd.f32 %v1061_v61, %v1039_v26  ;;  %v2487_v58 = vpop.f32.mrb[2].mxu0 }
 0x227   : > { %v1290_v22 = vand.u32 2147483647, %v3301_v59  ;;  %v1293_v15 = vand.u32 2139095040, %v3301_v59  ;;  %v3307_v3 = vadd.f32 %v2487_v58, %v1076_v43  ;;  %v1042_v0 = vpop.f32.mrb[3].mxu0 }
 0x228   : > { %v1082_v7 = vand.u32 2147483647, %v3303_v33  ;;  %v1085_v31 = vand.u32 2139095040, %v3303_v33  ;;  %v3321_v54 = vadd.f32 %v1066_v12, %v1042_v0 }
 0x229   : > { %v1294_v2 = vshrl.u32 %v1293_v15, 23  ;;  %v1297_v8 = vand.u32 8388607, %v1290_v22  ;;  %v1397_v25 = vand.u32 2139095040, %v3307_v3  ;;  %v1394_v63 = vand.u32 2147483647, %v3307_v3 }
 0x22a   : > { %v1086_v52 = vshrl.u32 %v1085_v31, 23  ;;  %v1089_v10 = vand.u32 8388607, %v1082_v7  ;;  %v1189_v42 = vand.u32 2139095040, %v3321_v54 }
 0x22b   : > { %v2394_v5 = vadd.s32 4294967169, %v1294_v2  ;;  %v1298_v14 = vor.u32 8388608, %v1297_v8  ;;  %v1398_v35 = vshrl.u32 %v1397_v25, 23  ;;  %v3319_v44 = vand.u32 8388607, %v1394_v63 }
 0x22c   : > { %v2386_v17 = vadd.s32 4294967169, %v1086_v52  ;;  %v1090_v39 = vor.u32 8388608, %v1089_v10 }
 0x22d   : > { %v1300_v24 = vadd.s32 1, %v2394_v5  ;;  %v2398_v30 = vadd.s32 4294967169, %v1398_v35  ;;  %v3323_v1 = vshll.u32 %v1298_v14, 8  ;;  %v1402_v49 = vor.u32 8388608, %v3319_v44 }
 0x22e   : > { %v1092_v32 = vadd.s32 1, %v2386_v17  ;;  %v3325_v45 = vshll.u32 %v1090_v39, 8 }
 0x22f   : > { %vm1301_vm7 = vcmp.gt.s32.totalorder %v1300_v24, 0  ;;  %v3330_v41 = vadd.s32 1, %v2398_v30 }
 0x230   : > { %v1302_v53 = vsel %vm1301_vm7, %v1300_v24, 0  ;;  %vm1093_vm8 = vcmp.gt.s32.totalorder %v1092_v32, 0 }
 0x231   : > { %v1303_v23 = vshrl.u32 %v1302_v53, 5  ;;  %v1304_v40 = vand.u32 31, %v1302_v53  ;;  %v1094_v34 = vsel %vm1093_vm8, %v1092_v32, 0  ;;  %vm1405_vm14 = vcmp.gt.s32.totalorder %v3330_v41, 0 }
 0x232   : > { %v3327_v36 = vshrl.u32 %v1094_v34, 5  ;;  %v1096_v38 = vand.u32 31, %v1094_v34 }
 0x233   : > { %v1305_v37 = vsub.s32 32, %v1304_v40  ;;  %v1307_v18 = vshll.u32 %v2777_v4, %v1304_v40  ;;  %v1310_v29 = vshll.u32 %v2778_v6, %v1304_v40  ;;  %v1313_v19 = vshll.u32 %v2779_v9, %v1304_v40 }
 0x234   : > { %v1316_v21 = vshll.u32 %v2780_v11, %v1304_v40  ;;  %v1319_v16 = vshll.u32 %v2781_v13, %v1304_v40  ;;  %vm1322_vm9 = vcmp.lt.s32.totalorder %v1303_v23, 1  ;;  %vm1323_vm10 = vcmp.lt.s32.totalorder %v1303_v23, 2 }
 0x235   : > { %v1308_v47 = vshrl.u32 %v2778_v6, %v1305_v37  ;;  %v1311_v50 = vshrl.u32 %v2779_v9, %v1305_v37  ;;  %v1314_v46 = vshrl.u32 %v2780_v11, %v1305_v37  ;;  %v1306_v51 = vshrl.u32 %v2777_v4, %v1305_v37 }
 0x236   : > { %v1317_v28 = vshrl.u32 %v2781_v13, %v1305_v37  ;;  %v1320_v27 = vshrl.u32 %v2782_v20, %v1305_v37  ;;  %vm1324_vm12 = vcmp.lt.s32.totalorder %v1303_v23, 3  ;;  %v1097_v48 = vsub.s32 32, %v1096_v38 }
 0x237   : > { %v1309_v55 = vor.u32 %v1308_v47, %v1307_v18  ;;  %v1312_v56 = vor.u32 %v1311_v50, %v1310_v29  ;;  %v1315_v57 = vor.u32 %v1314_v46, %v1313_v19  ;;  %vm1325_vm13 = vcmp.lt.s32.totalorder %v1303_v23, 4 }
 0x238   : > { %v1318_v61 = vor.u32 %v1317_v28, %v1316_v21  ;;  %v1321_v12 = vor.u32 %v1320_v27, %v1319_v16  ;;  %v1099_v62 = vshll.u32 %v2777_v4, %v1096_v38  ;;  %v1102_v2 = vshll.u32 %v2778_v6, %v1096_v38 }
 0x239   : > { %v1326_v60 = vsel %vm1322_vm9, %v1306_v51, %v1309_v55  ;;  %v1327_v26 = vsel %vm1325_vm13, %v1315_v57, 2102212464  ;;  %v1330_v43 = vsel %vm1322_vm9, %v1309_v55, %v1312_v56  ;;  %v1334_v58 = vsel %vm1322_vm9, %v1312_v56, %v1315_v57 }
 0x23a   : > { %v1328_v15 = vsel %vm1324_vm12, %v1312_v56, %v1327_v26  ;;  %v1331_v0 = vsel %vm1325_vm13, %v1318_v61, 920167782  ;;  %v1335_v31 = vsel %vm1325_vm13, %v1321_v12, 1326507024  ;;  %v1098_v10 = vshrl.u32 %v2777_v4, %v1097_v48 }
 0x23b   : > { %v1332_v8 = vsel %vm1324_vm12, %v1315_v57, %v1331_v0  ;;  %v1336_v52 = vsel %vm1324_vm12, %v1318_v61, %v1335_v31  ;;  %v1100_v25 = vshrl.u32 %v2778_v6, %v1097_v48  ;;  %v1329_v5 = vsel %vm1323_vm10, %v1326_v60, %v1328_v15 }
 0x23c   : > { %v1333_v14 = vsel %vm1323_vm10, %v1330_v43, %v1332_v8  ;;  %v1337_v17 = vsel %vm1323_vm10, %v1334_v58, %v1336_v52  ;;  %v1103_v35 = vshrl.u32 %v2779_v9, %v1097_v48  ;;  %v1105_v34 = vshll.u32 %v2779_v9, %v1096_v38 }
 0x23d   : > { %v3360_v24 = vmul.u32.u64.low %v3323_v1, %v1337_v17  ;;  %v3361_v39 = vmul.u32.u64.high %v3323_v1, %v1337_v17, %v3360_v24  ;;  %v3364_v32 = vmul.u32.u64.low %v3323_v1, %v1333_v14  ;;  %v3365_v30 = vmul.u32.u64.high %v3323_v1, %v1333_v14, %v3364_v32 }
 0x23e   : > { %v1101_v53 = vor.u32 %v1100_v25, %v1099_v62  ;;  %v1104_v40 = vor.u32 %v1103_v35, %v1102_v2  ;;  %v1106_v37 = vshrl.u32 %v2780_v11, %v1097_v48  ;;  %v1345_v23 = vmul.u32 %v3323_v1, %v1329_v5 }
 0x23f   : > { %v1108_v18 = vshll.u32 %v2780_v11, %v1096_v38  ;;  %v1109_v29 = vshrl.u32 %v2781_v13, %v1097_v48  ;;  %v1112_v19 = vshrl.u32 %v2782_v20, %v1097_v48  ;;  %v1111_v16 = vshll.u32 %v2781_v13, %v1096_v38 }
 0x240   : > { %v1107_v21 = vor.u32 %v1106_v37, %v1105_v34  ;;  %vm1114_vm15 = vcmp.lt.s32.totalorder %v3327_v36, 1  ;;  %vm1115_vm0 = vcmp.lt.s32.totalorder %v3327_v36, 2  ;;  %vm1347_vm1 = vc.u32 %v3361_v39, %v3364_v32 }
 0x241   : > { %v1348_v47 = vadd.s32 1, %v3365_v30  ;;  %v1110_v50 = vor.u32 %v1109_v29, %v1108_v18  ;;  %vm1116_vm2 = vcmp.lt.s32.totalorder %v3327_v36, 3  ;;  %v1113_v1 = vor.u32 %v1112_v19, %v1111_v16 }
 0x242   : > { %vm1117_vm3 = vcmp.lt.s32.totalorder %v3327_v36, 4  ;;  %v1118_v46 = vsel %vm1114_vm15, %v1098_v10, %v1101_v53  ;;  %v1122_v51 = vsel %vm1114_vm15, %v1101_v53, %v1104_v40  ;;  %v1126_v55 = vsel %vm1114_vm15, %v1104_v40, %v1107_v21 }
 0x243   : > { %v1349_v28 = vsel %vm1347_vm1, %v1348_v47, %v3365_v30  ;;  %v1119_v38 = vsel %vm1117_vm3, %v1107_v21, 2102212464  ;;  %v1123_v27 = vsel %vm1117_vm3, %v1110_v50, 920167782  ;;  %v1127_v61 = vsel %vm1117_vm3, %v1113_v1, 1326507024 }
 0x244   : > { %v1350_v56 = vadd.s32 %v1349_v28, %v1345_v23  ;;  %v1120_v57 = vsel %vm1116_vm2, %v1104_v40, %v1119_v38  ;;  %v1124_v48 = vsel %vm1116_vm2, %v1107_v21, %v1123_v27  ;;  %v1128_v62 = vsel %vm1116_vm2, %v1110_v50, %v1127_v61 }
 0x245   : > { %v1125_v12 = vsel %vm1115_vm0, %v1122_v51, %v1124_v48  ;;  %v1406_v60 = vsel %vm1405_vm14, %v3330_v41, 0  ;;  %v1190_v26 = vshrl.u32 %v1189_v42, 23  ;;  %v1129_v58 = vsel %vm1115_vm0, %v1126_v55, %v1128_v62 }
 0x246   : > { %v1351_v43 = vadd.s32 536870912, %v1350_v56  ;;  %v3393_v15 = vmul.u32.u64.low %v3325_v45, %v1125_v12  ;;  %v3394_v0 = vmul.u32.u64.high %v3325_v45, %v1125_v12, %v3393_v15  ;;  %v1121_v31 = vsel %vm1115_vm0, %v1118_v46, %v1120_v57 }
 0x247   : > { %v3400_v2 = vmul.u32.u64.low %v3325_v45, %v1129_v58  ;;  %v3401_v8 = vmul.u32.u64.high %v3325_v45, %v1129_v58, %v3400_v2  ;;  %v1407_v41 = vshrl.u32 %v1406_v60, 5  ;;  %v1408_v42 = vand.u32 31, %v1406_v60 }
 0x248   : > { %v3403_v52 = vshrl.u32 %v1351_v43, 30  ;;  %v3407_v10 = vshll.u32 %v1402_v49, 8  ;;  %v1137_v5 = vmul.u32 %v3325_v45, %v1121_v31  ;;  %v1140_v14 = vadd.s32 1, %v3394_v0 }
 0x249   : > { %v1409_v36 = vsub.s32 32, %v1408_v42  ;;  %vm1139_vm4 = vc.u32 %v3401_v8, %v3393_v15  ;;  %vm1426_vm5 = vcmp.lt.s32.totalorder %v1407_v41, 1  ;;  %vm1427_vm6 = vcmp.lt.s32.totalorder %v1407_v41, 2 }
 0x24a   : > { %v1353_v25 = vshll.u32 %v3403_v52, 30  ;;  %v2390_v17 = vadd.s32 4294967169, %v1190_v26  ;;  %v1141_v24 = vsel %vm1139_vm4, %v1140_v14, %v3394_v0  ;;  %v1411_v44 = vshll.u32 %v2777_v4, %v1408_v42 }
 0x24b   : > { %vm1428_vm7 = vcmp.lt.s32.totalorder %v1407_v41, 3  ;;  %v1142_v49 = vadd.s32 %v1141_v24, %v1137_v5  ;;  %v1412_v30 = vshrl.u32 %v2778_v6, %v1409_v36  ;;  %v1414_v45 = vshll.u32 %v2778_v6, %v1408_v42 }
 0x24c   : > { %v3414_v35 = vsub.s32 %v1350_v56, %v1353_v25  ;;  %v1415_v53 = vshrl.u32 %v2779_v9, %v1409_v36  ;;  %v1417_v40 = vshll.u32 %v2779_v9, %v1408_v42  ;;  %v1418_v34 = vshrl.u32 %v2780_v11, %v1409_v36 }
 0x24d   : > { %v1420_v37 = vshll.u32 %v2780_v11, %v1408_v42  ;;  %v1421_v23 = vshrl.u32 %v2781_v13, %v1409_v36  ;;  %v1143_v29 = vadd.s32 536870912, %v1142_v49  ;;  %v1413_v19 = vor.u32 %v1412_v30, %v1411_v44 }
 0x24e   : > { %v1356_v18 = vsub.s32 0, %v3414_v35  ;;  %v1416_v21 = vor.u32 %v1415_v53, %v1414_v45  ;;  %v1419_v16 = vor.u32 %v1418_v34, %v1417_v40  ;;  %v1423_v50 = vshll.u32 %v2781_v13, %v1408_v42 }
 0x24f   : > { %v1422_v47 = vor.u32 %v1421_v23, %v1420_v37  ;;  %v1424_v1 = vshrl.u32 %v2782_v20, %v1409_v36  ;;  %v3428_v46 = vshrl.u32 %v1143_v29, 30  ;;  %v1410_v51 = vshrl.u32 %v2777_v4, %v1409_v36 }
 0x250   : > { %vm1429_vm8 = vcmp.lt.s32.totalorder %v1407_v41, 4  ;;  %v1434_v28 = vsel %vm1426_vm5, %v1413_v19, %v1416_v21  ;;  %v1196_v56 = vadd.s32 1, %v2390_v17  ;;  %v2395_v57 = vmin.u32 %v1356_v18, %v3414_v35 }
 0x251   : > { %v1425_v38 = vor.u32 %v1424_v1, %v1423_v50  ;;  %v1431_v27 = vsel %vm1429_vm8, %v1419_v16, 2102212464  ;;  %v1435_v55 = vsel %vm1429_vm8, %v1422_v47, 920167782  ;;  %v1145_v48 = vshll.u32 %v3428_v46, 30 }
 0x252   : > { %v1436_v61 = vsel %vm1428_vm7, %v1419_v16, %v1435_v55  ;;  %v1438_v12 = vsel %vm1426_vm5, %v1416_v21, %v1419_v16  ;;  %v1430_v62 = vsel %vm1426_vm5, %v1410_v51, %v1413_v19  ;;  %v1432_v60 = vsel %vm1428_vm7, %v1416_v21, %v1431_v27 }
 0x253   : > { %v1437_v26 = vsel %vm1427_vm6, %v1434_v28, %v1436_v61  ;;  %v1439_v43 = vsel %vm1429_vm8, %v1425_v38, 1326507024  ;;  %v3439_v58 = vsub.s32 %v1142_v49, %v1145_v48  ;;  %vm1197_vm9 = vcmp.gt.s32.totalorder %v1196_v56, 0 }
 0x254   : > { %v1440_v0 = vsel %vm1428_vm7, %v1422_v47, %v1439_v43  ;;  %v3443_v31 = vmul.u32.u64.low %v3407_v10, %v1437_v26  ;;  %v3444_v2 = vmul.u32.u64.high %v3407_v10, %v1437_v26, %v3443_v31  ;;  %v1358_v36 = vclz %v2395_v57 }
 0x255   : > { %v1441_v42 = vsel %vm1427_vm6, %v1438_v12, %v1440_v0  ;;  %v1148_v25 = vsub.s32 0, %v3439_v58  ;;  %v1433_v17 = vsel %vm1427_vm6, %v1430_v62, %v1432_v60  ;;  %v1198_v24 = vsel %vm1197_vm9, %v1196_v56, 0 }
 0x256   : > { %v3450_v5 = vmul.u32.u64.low %v3407_v10, %v1441_v42  ;;  %v3451_v14 = vmul.u32.u64.high %v3407_v10, %v1441_v42, %v3450_v5  ;;  %v1452_v49 = vadd.s32 1, %v3444_v2  ;;  %v1200_v30 = vand.u32 31, %v1198_v24 }
 0x257   : > { %v2387_v44 = vmin.u32 %v1148_v25, %v3439_v58  ;;  %v1449_v45 = vmul.u32 %v3407_v10, %v1433_v17  ;;  %v2396_v53 = vadd.s32 4294967294, %v1358_v36  ;;  %v1186_v41 = vand.u32 2147483647, %v3321_v54 }
 0x258   : > { %vm1451_vm10 = vc.u32 %v3451_v14, %v3443_v31  ;;  %v1201_v23 = vsub.s32 32, %v1200_v30  ;;  %v1203_v28 = vshll.u32 %v2777_v4, %v1200_v30  ;;  %v1206_v38 = vshll.u32 %v2778_v6, %v1200_v30 }
 0x259   : > { %v1453_v40 = vsel %vm1451_vm10, %v1452_v49, %v3444_v2  ;;  %v1150_v34 = vclz %v2387_v44  ;;  %vm2397_vm12 = vcmp.lt.s32.totalorder %v2396_v53, 0  ;;  %v1193_v51 = vand.u32 8388607, %v1186_v41 }
 0x25a   : > { %v1454_v37 = vadd.s32 %v1453_v40, %v1449_v45  ;;  %v1204_v21 = vshrl.u32 %v2778_v6, %v1201_v23  ;;  %v1207_v10 = vshrl.u32 %v2779_v9, %v1201_v23  ;;  %v1210_v16 = vshrl.u32 %v2780_v11, %v1201_v23 }
 0x25b   : > { %v2388_v29 = vadd.s32 4294967294, %v1150_v34  ;;  %v1213_v47 = vshrl.u32 %v2781_v13, %v1201_v23  ;;  %v3467_v50 = vsel %vm2397_vm12, 0, %v2396_v53  ;;  %v1209_v27 = vshll.u32 %v2779_v9, %v1200_v30 }
 0x25c   : > { %v1455_v18 = vadd.s32 536870912, %v1454_v37  ;;  %v1212_v55 = vshll.u32 %v2780_v11, %v1200_v30  ;;  %v1216_v56 = vshrl.u32 %v2782_v20, %v1201_v23  ;;  %v1199_v48 = vshrl.u32 %v1198_v24, 5 }
 0x25d   : > { %vm2389_vm13 = vcmp.lt.s32.totalorder %v2388_v29, 0  ;;  %v1205_v61 = vor.u32 %v1204_v21, %v1203_v28  ;;  %v1208_v12 = vor.u32 %v1207_v10, %v1206_v38  ;;  %v1211_v62 = vor.u32 %v1210_v16, %v1209_v27 }
 0x25e   : > { %v3461_v19 = vshrl.u32 %v1455_v18, 30  ;;  %v1214_v60 = vor.u32 %v1213_v47, %v1212_v55  ;;  %v1215_v26 = vshll.u32 %v2781_v13, %v1200_v30  ;;  %v1366_v0 = vsub.s32 4294967266, %v3467_v50 }
 0x25f   : > { %v1194_v2 = vor.u32 8388608, %v1193_v51  ;;  %v1202_v42 = vshrl.u32 %v2777_v4, %v1201_v23  ;;  %v3483_v5 = vsel %vm2389_vm13, 0, %v2388_v29  ;;  %vm1218_vm14 = vcmp.lt.s32.totalorder %v1199_v48, 1 }
 0x260   : > { %v1457_v1 = vshll.u32 %v3461_v19, 30  ;;  %v1217_v25 = vor.u32 %v1216_v56, %v1215_v26  ;;  %vm1221_vm15 = vcmp.lt.s32.totalorder %v1199_v48, 4  ;;  %vm1220_vm0 = vcmp.lt.s32.totalorder %v1199_v48, 3 }
 0x261   : > { %v1223_v17 = vsel %vm1221_vm15, %v1211_v62, 2102212464  ;;  %v1226_v24 = vsel %vm1218_vm14, %v1205_v61, %v1208_v12  ;;  %v1227_v44 = vsel %vm1221_vm15, %v1214_v60, 920167782  ;;  %vm1219_vm1 = vcmp.lt.s32.totalorder %v1199_v48, 2 }
 0x262   : > { %v3477_v57 = vsub.s32 %v1454_v37, %v1457_v1  ;;  %v1228_v30 = vsel %vm1220_vm0, %v1211_v62, %v1227_v44  ;;  %v1230_v45 = vsel %vm1218_vm14, %v1208_v12, %v1211_v62  ;;  %v1367_v53 = vadd.s32 127, %v1366_v0 }
 0x263   : > { %v1229_v40 = vsel %vm1219_vm1, %v1226_v24, %v1228_v30  ;;  %v1231_v34 = vsel %vm1221_vm15, %v1217_v25, 1326507024  ;;  %v1234_v37 = vshll.u32 %v1194_v2, 8  ;;  %v1222_v18 = vsel %vm1218_vm14, %v1202_v42, %v1205_v61 }
 0x264   : > { %v1460_v43 = vsub.s32 0, %v3477_v57  ;;  %v1224_v29 = vsel %vm1220_vm0, %v1208_v12, %v1223_v17  ;;  %v1232_v21 = vsel %vm1220_vm0, %v1214_v60, %v1231_v34  ;;  %v1158_v10 = vsub.s32 4294967266, %v3483_v5 }
 0x265   : > { %v1233_v16 = vsel %vm1219_vm1, %v1230_v45, %v1232_v21  ;;  %v3489_v47 = vmul.u32.u64.low %v1234_v37, %v1229_v40  ;;  %v3490_v1 = vmul.u32.u64.high %v1234_v37, %v1229_v40, %v3489_v47  ;;  %v1225_v27 = vsel %vm1219_vm1, %v1222_v18, %v1224_v29 }
 0x266   : > { %v2399_v36 = vmin.u32 %v1460_v43, %v3477_v57  ;;  %v3493_v51 = vmul.u32.u64.low %v1234_v37, %v1233_v16  ;;  %v3494_v28 = vmul.u32.u64.high %v1234_v37, %v1233_v16, %v3493_v51  ;;  %v1362_v55 = vsub.s32 32, %v3467_v50 }
 0x267   : > { %v1450_v56 = vadd.s32 %v3443_v31, %v3451_v14  ;;  %v1346_v62 = vadd.s32 %v3364_v32, %v3361_v39  ;;  %v1368_v60 = vshll.u32 %v1367_v53, 23  ;;  %v1159_v26 = vadd.s32 127, %v1158_v10  ;;  %v1498_v39 = vld [vmem:[%s3968_s5] sm:$0xff]  ;;  %v1499_v32 = vld [vmem:[%s3968_s5 + $0x8] sm:$0xff] }
 0x268   : > { %v1462_v49 = vclz %v2399_v36  ;;  %v1244_v43 = vadd.s32 1, %v3490_v1  ;;  %v1241_v42 = vmul.u32 %v1234_v37, %v1225_v27  ;;  %vm1243_vm3 = vc.u32 %v3494_v28, %v3489_v47 }
 0x269   : > { %v1154_v48 = vsub.s32 32, %v3483_v5  ;;  %v1364_v31 = vshrl.u32 %v1346_v62, %v1362_v55  ;;  %v1363_v24 = vshll.u32 %v3414_v35, %v3467_v50  ;;  %v1138_v44 = vadd.s32 %v3393_v15, %v3401_v8 }
 0x26a   : > { %v2400_v23 = vadd.s32 4294967294, %v1462_v49  ;;  %v1245_v25 = vsel %vm1243_vm3, %v1244_v43, %v3490_v1  ;;  %v1160_v49 = vshll.u32 %v1159_v26, 23  ;;  %v1369_v30 = vor.u32 4788187, %v1368_v60 }
 0x26b   : > { %v1246_v17 = vadd.s32 %v1245_v25, %v1241_v42  ;;  %v1156_v40 = vshrl.u32 %v1138_v44, %v1154_v48  ;;  %v3518_v34 = vpack.c.bf16 %v1499_v32, %v1498_v39  ;;  %v1365_v37 = vor.u32 %v1364_v31, %v1363_v24 }
 0x26c   : > { %vm2401_vm2 = vcmp.lt.s32.totalorder %v2400_v23, 0  ;;  %v1155_v29 = vshll.u32 %v3439_v58, %v3483_v5  ;;  %v1161_v21 = vor.u32 4788187, %v1160_v49  ;;  %v1370_v15 = vand.u32 2147483647, %v1369_v30 }
 0x26d   : > { %v1465_v38 = vsel %vm2401_vm2, 0, %v2400_v23  ;;  %v1247_v53 = vadd.s32 536870912, %v1246_v17  ;;  %2492 = vmatprep.mubr.msk.bf16.mxu1 %vm894_vm11, %v3518_v34  ;;  %v1372_v10 = vcvt.s32.f32 %v1365_v37  ;;  %v1508_v58 = vunpack.c.l.bf16 %v3518_v34 }
 0x26e   : > { %v1466_v61 = vsub.s32 32, %v1465_v38  ;;  %v1470_v12 = vsub.s32 4294967266, %v1465_v38  ;;  %v1467_v14 = vshll.u32 %v3477_v57, %v1465_v38  ;;  %v1157_v50 = vor.u32 %v1156_v40, %v1155_v29 }
 0x26f   : > { %v3520_v18 = vshrl.u32 %v1247_v53, 30  ;;  %v1162_v51 = vand.u32 2147483647, %v1161_v21  ;;  %v1373_v38 = vmul.f32 %v1372_v10, %v1370_v15  ;;  %v1509_v5 = vunpack.c.h.bf16 %v3518_v34 }
 0x270   : > { %v1468_v0 = vshrl.u32 %v1450_v56, %v1466_v61  ;;  %v1471_v2 = vadd.s32 127, %v1470_v12  ;;  %v1164_v55 = vcvt.s32.f32 %v1157_v50  ;;  %vm1396_vm4 = vcmp.lt.s32.totalorder %v3307_v3, 0 }
 0x271   : > { %v1249_v35 = vshll.u32 %v3520_v18, 30  ;;  %v1374_v62 = vxor.u32 2147483648, %v1373_v38  ;;  %v3530_v26 = vsub.f32 %v1498_v39, %v1508_v58  ;;  %v3532_v43 = vsub.f32 %v1499_v32, %v1509_v5 }
 0x272   : > { %v1472_v36 = vshll.u32 %v1471_v2, 23  ;;  %v1469_v45 = vor.u32 %v1468_v0, %v1467_v14  ;;  %v1165_v12 = vmul.f32 %v1164_v55, %v1162_v51  ;;  %vm1292_vm5 = vcmp.lt.s32.totalorder %v3301_v59, 0 }
 0x273   : > { %v1250_v1 = vsub.s32 %v1246_v17, %v1249_v35  ;;  %v1516_v48 = vpack.c.bf16 %v3532_v43, %v3530_v26  ;;  %v1375_v25 = vsel %vm1292_vm5, %v1374_v62, %v1373_v38  ;;  %vm3543_vm6 = vcmp.le.f32.partialorder %v1394_v63, 0.7853982 }
 0x274   : > { %v1473_v57 = vor.u32 4788187, %v1472_v36  ;;  %v1476_v8 = vcvt.s32.f32 %v1469_v45  ;;  %v1166_v42 = vxor.u32 2147483648, %v1165_v12  ;;  %vm1084_vm8 = vcmp.lt.s32.totalorder %v3303_v33, 0 }
 0x275   : > { %v1252_v27 = vsub.s32 0, %v1250_v1  ;;  %vm3553_vm9 = vcmp.le.f32.partialorder %v1290_v22, 0.7853982  ;;  %v1242_v63 = vadd.s32 %v3489_v47, %v3494_v28  ;;  %v1376_v24 = vsub.s32 4, %v3403_v52 }
 0x276   : > { %v1474_v23 = vand.u32 2147483647, %v1473_v57  ;;  %v1378_v44 = vsel %vm3553_vm9, %v3301_v59, %v1375_v25  ;;  %v1167_v49 = vsel %vm1084_vm8, %v1166_v42, %v1165_v12  ;;  %v1480_v30 = vsub.s32 4, %v3461_v19 }
 0x277   : > { %v2391_v61 = vmin.u32 %v1252_v27, %v1250_v1  ;;  %vm3568_vm10 = vcmp.le.f32.partialorder %v1082_v7, 0.7853982  ;;  %v1168_v7 = vsub.s32 4, %v3428_v46  ;;  %vm1188_vm12 = vcmp.lt.s32.totalorder %v3321_v54, 0 }
 0x278   : > { %v1477_v16 = vmul.f32 %v1476_v8, %v1474_v23  ;;  %v1170_v40 = vsel %vm3568_vm10, %v3303_v33, %v1167_v49  ;;  %v1481_v37 = vsel %vm1396_vm4, %v1480_v30, %v3461_v19  ;;  %v1377_v23 = vsel %vm1292_vm5, %v1376_v24, %v3403_v52 }
 0x279   : > { %v1254_v60 = vclz %v2391_v61  ;;  %v1483_v8 = vsel %vm3543_vm6, 0, %v1481_v37  ;;  %v1379_v35 = vsel %vm3553_vm9, 0, %v1377_v23  ;;  %v1272_v19 = vsub.s32 4, %v3520_v18 }
 0x27a   : > { %v1478_v56 = vxor.u32 2147483648, %v1477_v16  ;;  %v1169_v52 = vsel %vm1084_vm8, %v1168_v7, %v3428_v46  ;;  %v1487_v10 = vadd.s32 3, %v1483_v8  ;;  %v1383_v51 = vadd.s32 3, %v1379_v35 }
 0x27b   : > { %v2392_v2 = vadd.s32 4294967294, %v1254_v60  ;;  %vm3593_vm13 = vcmp.le.f32.partialorder %v1186_v41, 0.7853982  ;;  %v1171_v61 = vsel %vm3568_vm10, 0, %v1169_v52  ;;  %v1273_v46 = vsel %vm1188_vm12, %v1272_v19, %v3520_v18 }
 0x27c   : > { %v1479_v0 = vsel %vm1396_vm4, %v1478_v56, %v1477_v16  ;;  %v1488_v5 = vand.u32 3, %v1487_v10  ;;  %v1384_v62 = vand.u32 3, %v1383_v51  ;;  %v1175_v41 = vadd.s32 3, %v1171_v61 }
 0x27d   : > { %vm2393_vm7 = vcmp.lt.s32.totalorder %v2392_v2, 0  ;;  %v1482_v14 = vsel %vm3543_vm6, %v3307_v3, %v1479_v0  ;;  %vm1486_vm6 = vweird.f32 %v3307_v3 }
 0x27e   : > { %v1257_v36 = vsel %vm2393_vm7, 0, %v2392_v2  ;;  %2678 = vcosq.f32 %v1482_v14  ;;  %v1275_v2 = vsel %vm3593_vm13, 0, %v1273_v46  ;;  %vm1490_vm14 = vcmp.eq.s32.totalorder %v1488_v5, 0 }
 0x27f   : > { %v1258_v39 = vsub.s32 32, %v1257_v36  ;;  %v1262_v32 = vsub.s32 4294967266, %v1257_v36  ;;  %v1259_v22 = vshll.u32 %v1250_v1, %v1257_v36  ;;  %2680 = vsinq.f32 %v1482_v14 }
 0x280   : > { %2682 = vsinq.f32 %v1378_v44  ;;  %vm1493_vm15 = vcmp.eq.s32.totalorder %v1488_v5, 2  ;;  %v1279_v18 = vadd.s32 3, %v1275_v2  ;;  %vm1386_vm0 = vcmp.eq.s32.totalorder %v1384_v62, 0 }
 0x281   : > { %v1260_v45 = vshrl.u32 %v1242_v63, %v1258_v39  ;;  %v1263_v57 = vadd.s32 127, %v1262_v32  ;;  %2684 = vcosq.f32 %v1378_v44  ;;  %v1176_v63 = vand.u32 3, %v1175_v41 }
 0x282   : > { %2686 = vcosq.f32 %v1170_v40  ;;  %vm1389_vm1 = vcmp.eq.s32.totalorder %v1384_v62, 2  ;;  %vm1489_vm2 = vcmp.lt.s32.totalorder %v1488_v5, 2  ;;  %v1280_v30 = vand.u32 3, %v1279_v18 }
 0x283   : > { %v1261_v28 = vor.u32 %v1260_v45, %v1259_v22  ;;  %v1264_v53 = vshll.u32 %v1263_v57, 23  ;;  %2688 = vsinq.f32 %v1170_v40  ;;  %vm1385_vm3 = vcmp.lt.s32.totalorder %v1384_v62, 2 }
 0x284   : > { %vm1178_vm4 = vcmp.eq.s32.totalorder %v1176_v63, 0  ;;  %vm1181_vm5 = vcmp.eq.s32.totalorder %v1176_v63, 2  ;;  %vm1382_vm7 = vweird.f32 %v3301_v59  ;;  %vm1177_vm8 = vcmp.lt.s32.totalorder %v1176_v63, 2 }
 0x285   : > { %v1265_v29 = vor.u32 4788187, %v1264_v53  ;;  %v1268_v15 = vcvt.s32.f32 %v1261_v28  ;;  %vm1285_vm9 = vcmp.eq.s32.totalorder %v1280_v30, 2  ;;  %vm1282_vm10 = vcmp.eq.s32.totalorder %v1280_v30, 0 }
 0x286   : > { %v2783_v62 = vmov 0.0  }
 0x287   : > { %v1266_v21 = vand.u32 2147483647, %v1265_v29  ;;  %2512 = vmatprep.subr.bf16.mxu0 %v2783_v62 }
 0x288   : > { %v2679_v16 = vpop.eup %2678 }
 0x289   : > { %v1269_v50 = vmul.f32 %v1268_v15, %v1266_v21  ;;  %v2681_v38 = vpop.eup %2680  ;;  %v1494_v0 = vxor.u32 2147483648, %v2679_v16 }
 0x28a   : > { %v2683_v27 = vpop.eup %2682  ;;  %v1491_v60 = vxor.u32 2147483648, %v2681_v38 }
 0x28b   : > { %v1270_v1 = vxor.u32 2147483648, %v1269_v50  ;;  %v2685_v12 = vpop.eup %2684  ;;  %v1387_v42 = vxor.u32 2147483648, %v2683_v27  ;;  %v1495_v17 = vsel %vm1493_vm15, %v1494_v0, %v2681_v38 }
 0x28c   : > { %v2687_v25 = vpop.eup %2686  ;;  %v1390_v31 = vxor.u32 2147483648, %v2685_v12  ;;  %v1492_v36 = vsel %vm1490_vm14, %v2679_v16, %v1491_v60  ;;  %vm1278_vm14 = vweird.f32 %v3321_v54  ;;  %v1701_v60 = vpop.permute.xlu0 %1700 }
 0x28d   : > { %v1271_v56 = vsel %vm1188_vm12, %v1270_v1, %v1269_v50  ;;  %v2689_v14 = vpop.eup %2688  ;;  %v1388_v39 = vsel %vm1386_vm0, %v2685_v12, %v1387_v42  ;;  %v1182_v24 = vxor.u32 2147483648, %v2687_v25  ;;  %v1496_v49 = vsel %vm1489_vm2, %v1492_v36, %v1495_v17 }
 0x28e   : > { %v1274_v58 = vsel %vm3593_vm13, %v3321_v54, %v1271_v56  ;;  %v1179_v32 = vxor.u32 2147483648, %v2689_v14  ;;  %v1391_v44 = vsel %vm1389_vm1, %v1390_v31, %v2683_v27  ;;  %v1497_v28 = vsel %vm1486_vm6, nan, %v1496_v49  ;;  %v1501_v54 = vld [vmem:[%s3968_s5 + $0x18] sm:$0xff] }
 0x28f   : > { %2690 = vcosq.f32 %v1274_v58  ;;  %v1392_v22 = vsel %vm1385_vm3, %v1388_v39, %v1391_v44  ;;  %v1183_v47 = vsel %vm1181_vm5, %v1182_v24, %v2689_v14  ;;  %vm1281_vm12 = vcmp.lt.s32.totalorder %v1280_v30, 2 }
 0x290   : > { %2692 = vsinq.f32 %v1274_v58  ;;  %v1180_v57 = vsel %vm1178_vm4, %v2687_v25, %v1179_v32  ;;  %v1393_v23 = vsel %vm1382_vm7, nan, %v1392_v22  ;;  %vm1174_vm13 = vweird.f32 %v3303_v33  ;;  %v1500_v33 = vld [vmem:[%s3968_s5 + $0x10] sm:$0xff]  ;;  %v1711_v43 = vpop.permute.xlu0 %1710 }
 0x291   : > { %v1184_v29 = vsel %vm1177_vm8, %v1180_v57, %v1183_v47  ;;  %v1519_v21 = vpack.c.bf16 %v1497_v28, %v1393_v23  ;;  %v1507_v56 = vpack.c.bf16 %v1501_v54, %v1500_v33 }
 0x292   : > { %v1185_v8 = vsel %vm1174_vm13, nan, %v1184_v29 }
 0x293   : > { %v1522_v19 = vunpack.c.l.bf16 %v1519_v21  ;;  %v1523_v59 = vunpack.c.h.bf16 %v1519_v21  ;;  %v1510_v61 = vunpack.c.l.bf16 %v1507_v56  ;;  %v1511_v46 = vunpack.c.h.bf16 %v1507_v56 }
 0x295   : > { %v1526_v51 = vsub.f32 %v1393_v23, %v1522_v19  ;;  %v1527_v38 = vsub.f32 %v1497_v28, %v1523_v59  ;;  %v1514_v12 = vsub.f32 %v1500_v33, %v1510_v61  ;;  %v1515_v58 = vsub.f32 %v1501_v54, %v1511_v46 }
 0x297   : > { %v1529_v55 = vpack.c.bf16 %v1527_v38, %v1526_v51  ;;  %v1517_v5 = vpack.c.bf16 %v1515_v58, %v1514_v12 }
 0x299   : > { %v2691_v45 = vpop.eup %2690 }
 0x29a   : > { %v2693_v53 = vpop.eup %2692  ;;  %v1286_v40 = vxor.u32 2147483648, %v2691_v45 }
 0x29b   : > { %v1283_v37 = vxor.u32 2147483648, %v2693_v53 }
 0x29c   : > { %v1287_v7 = vsel %vm1285_vm9, %v1286_v40, %v2693_v53 }
 0x29d   : > { %v1284_v15 = vsel %vm1282_vm10, %v2691_v45, %v1283_v37 }
 0x29e   : > { %v1288_v3 = vsel %vm1281_vm12, %v1284_v15, %v1287_v7 }
 0x29f   : > { %v1289_v35 = vsel %vm1278_vm14, nan, %v1288_v3 }
 0x2a0   : > { %v1518_v50 = vpack.c.bf16 %v1289_v35, %v1185_v8 }
 0x2a2   : > { %v1520_v52 = vunpack.c.l.bf16 %v1518_v50  ;;  %v1521_v10 = vunpack.c.h.bf16 %v1518_v50 }
 0x2a4   : > { %v1524_v16 = vsub.f32 %v1185_v8, %v1520_v52  ;;  %v1525_v1 = vsub.f32 %v1289_v35, %v1521_v10 }
 0x2a6   : > { %v1528_v27 = vpack.c.bf16 %v1525_v1, %v1524_v16 }
 0x2a8   : > { %2488 = vmatprep.subr.bf16.mxu1 %v1528_v27 }
 0x2a9   : > { %2489 = vmatpush3.bf16.msra.mxu1 %v1528_v27 }
 0x2aa   : > { %2490 = vmatprep.subr.bf16.mxu1 %v1529_v55 }
 0x2ad   : > { %2491 = vmatpush3.bf16.msra.mxu1 %v1529_v55 }
 0x2ae   : > { %2496 = vmatprep.subr.bf16.mxu1 %v1518_v50 }
 0x2b0   : > { %2493 = vmatmul.mubr.msk.bf16.vlgmr.msra.gmra.mrb[0].mxu1 %vm894_vm11, %v1507_v56 }
 0x2b1   : > { %2497 = vmatpush3.bf16.msra.mxu1 %v1518_v50  ;;  %2500 = vmatprep.mubr.msk.bf16.mxu1 %vm894_vm11, %v3518_v34  ;;  %v1696_v34 = vpop.permute.xlu1 %1695 }
 0x2b2   : > { %2498 = vmatprep.subr.bf16.mxu1 %v1519_v21 }
 0x2b5   : > { %2499 = vmatpush3.bf16.msra.mxu1 %v1519_v21  ;;  %v1706_v0 = vpop.permute.xlu1 %1705 }
 0x2b6   : > { %2504 = vmatprep.subr.bf16.mxu1 %v1518_v50 }
 0x2bc   : > { %2501 = vmatmul.mubr.msk.bf16.vlgmr.msra.gmra.mrb[0].mxu1 %vm894_vm11, %v1507_v56 }
 0x2bd   : > { %2505 = vmatpush3.bf16.msra.mxu1 %v1518_v50  ;;  %2508 = vmatprep.mubr.msk.bf16.mxu1 %vm894_vm11, %v1516_v48 }
 0x2be   : > { %2506 = vmatprep.subr.bf16.mxu1 %v1519_v21 }
 0x2c1   : > { %2507 = vmatpush3.bf16.msra.mxu1 %v1519_v21 }
 0x2c2   : > { %2520 = vmatprep.subr.bf16.mxu1 %v2783_v62 }
 0x2c8   : > { %2509 = vmatmul.mubr.msk.bf16.vlgmr.msra.gmra.mrb[0].mxu1 %vm894_vm11, %v1517_v5 }
 0x39b   : > { %v2510_v41 = vpop.f32.mrb[0].mxu1 }
 0x39c   : > { %v3626_v2 = vadd.f32 %v2510_v41, %v1706_v0  ;;  %v1674_v26 = vpop.f32.mrb[1].mxu1 }
 0x39d   : > { %v3628_v48 = vadd.f32 %v1696_v34, %v1674_v26  ;;  %v2511_v42 = vpop.f32.mrb[2].mxu1 }
 0x39e   : > { %v1925_v25 = vand.u32 2147483647, %v3626_v2  ;;  %v1928_v31 = vand.u32 2139095040, %v3626_v2  ;;  %v3632_v14 = vadd.f32 %v2511_v42, %v1711_v43  ;;  %v1677_v18 = vpop.f32.mrb[3].mxu1 }
 0x39f   : > { %v1717_v36 = vand.u32 2147483647, %v3628_v48  ;;  %v1720_v17 = vand.u32 2139095040, %v3628_v48  ;;  %v3647_v3 = vadd.f32 %v1701_v60, %v1677_v18 }
 0x3a0   : > { %v1929_v63 = vshrl.u32 %v1928_v31, 23  ;;  %v1932_v39 = vand.u32 8388607, %v1925_v25  ;;  %v2032_v44 = vand.u32 2139095040, %v3632_v14 }
 0x3a1   : > { %v1721_v32 = vshrl.u32 %v1720_v17, 23  ;;  %v1724_v24 = vand.u32 8388607, %v1717_v36 }
 0x3a2   : > { %v2416_v49 = vadd.s32 4294967169, %v1929_v63  ;;  %v2033_v22 = vshrl.u32 %v2032_v44, 23  ;;  %v1933_v57 = vor.u32 8388608, %v1932_v39 }
 0x3a3   : > { %v2408_v30 = vadd.s32 4294967169, %v1721_v32  ;;  %v1725_v47 = vor.u32 8388608, %v1724_v24 }
 0x3a4   : > { %v1935_v45 = vadd.s32 1, %v2416_v49  ;;  %v2420_v53 = vadd.s32 4294967169, %v2033_v22  ;;  %v3641_v7 = vshll.u32 %v1933_v57, 8 }
 0x3a5   : > { %v1727_v28 = vadd.s32 1, %v2408_v30  ;;  %v3643_v21 = vshll.u32 %v1725_v47, 8 }
 0x3a6   : > { %vm1936_vm15 = vcmp.gt.s32.totalorder %v1935_v45, 0  ;;  %v3645_v15 = vadd.s32 1, %v2420_v53 }
 0x3a7   : > { %v1937_v40 = vsel %vm1936_vm15, %v1935_v45, 0  ;;  %vm1728_vm0 = vcmp.gt.s32.totalorder %v1727_v28, 0 }
 0x3a8   : > { %v1938_v37 = vshrl.u32 %v1937_v40, 5  ;;  %v1939_v23 = vand.u32 31, %v1937_v40  ;;  %v1729_v29 = vsel %vm1728_vm0, %v1727_v28, 0  ;;  %vm2040_vm5 = vcmp.gt.s32.totalorder %v3645_v15, 0 }
 0x3a9   : > { %v3650_v50 = vshrl.u32 %v1729_v29, 5  ;;  %v1731_v19 = vand.u32 31, %v1729_v29 }
 0x3aa   : > { %v1940_v8 = vsub.s32 32, %v1939_v23  ;;  %v1942_v35 = vshll.u32 %v2777_v4, %v1939_v23  ;;  %v1945_v59 = vshll.u32 %v2778_v6, %v1939_v23  ;;  %v1948_v52 = vshll.u32 %v2779_v9, %v1939_v23 }
 0x3ab   : > { %v1951_v10 = vshll.u32 %v2780_v11, %v1939_v23  ;;  %v1954_v16 = vshll.u32 %v2781_v13, %v1939_v23  ;;  %vm1957_vm1 = vcmp.lt.s32.totalorder %v1938_v37, 1  ;;  %vm1958_vm2 = vcmp.lt.s32.totalorder %v1938_v37, 2 }
 0x3ac   : > { %v1943_v1 = vshrl.u32 %v2778_v6, %v1940_v8  ;;  %v1946_v51 = vshrl.u32 %v2779_v9, %v1940_v8  ;;  %v1949_v38 = vshrl.u32 %v2780_v11, %v1940_v8  ;;  %v1941_v27 = vshrl.u32 %v2777_v4, %v1940_v8 }
 0x3ad   : > { %v1952_v55 = vshrl.u32 %v2781_v13, %v1940_v8  ;;  %v1955_v33 = vshrl.u32 %v2782_v20, %v1940_v8  ;;  %v1732_v46 = vsub.s32 32, %v1731_v19  ;;  %vm1959_vm3 = vcmp.lt.s32.totalorder %v1938_v37, 3 }
 0x3ae   : > { %v1944_v54 = vor.u32 %v1943_v1, %v1942_v35  ;;  %v1947_v56 = vor.u32 %v1946_v51, %v1945_v59  ;;  %v1950_v61 = vor.u32 %v1949_v38, %v1948_v52  ;;  %vm1960_vm4 = vcmp.lt.s32.totalorder %v1938_v37, 4 }
 0x3af   : > { %v1953_v12 = vor.u32 %v1952_v55, %v1951_v10  ;;  %v1956_v58 = vor.u32 %v1955_v33, %v1954_v16  ;;  %v1734_v42 = vshll.u32 %v2777_v4, %v1731_v19  ;;  %v1735_v17 = vshrl.u32 %v2778_v6, %v1732_v46 }
 0x3b0   : > { %v1961_v5 = vsel %vm1957_vm1, %v1941_v27, %v1944_v54  ;;  %v1962_v34 = vsel %vm1960_vm4, %v1950_v61, 2102212464  ;;  %v1965_v60 = vsel %vm1957_vm1, %v1944_v54, %v1947_v56  ;;  %v1969_v0 = vsel %vm1957_vm1, %v1947_v56, %v1950_v61 }
 0x3b1   : > { %v1963_v41 = vsel %vm1959_vm3, %v1947_v56, %v1962_v34  ;;  %v1966_v26 = vsel %vm1960_vm4, %v1953_v12, 920167782  ;;  %v1970_v43 = vsel %vm1960_vm4, %v1956_v58, 1326507024  ;;  %v1737_v63 = vshll.u32 %v2778_v6, %v1731_v19 }
 0x3b2   : > { %v1967_v31 = vsel %vm1959_vm3, %v1950_v61, %v1966_v26  ;;  %v1971_v18 = vsel %vm1959_vm3, %v1953_v12, %v1970_v43  ;;  %v1964_v39 = vsel %vm1958_vm2, %v1961_v5, %v1963_v41  ;;  %v1738_v44 = vshrl.u32 %v2779_v9, %v1732_v46 }
 0x3b3   : > { %v1968_v32 = vsel %vm1958_vm2, %v1965_v60, %v1967_v31  ;;  %v1972_v24 = vsel %vm1958_vm2, %v1969_v0, %v1971_v18  ;;  %v1736_v57 = vor.u32 %v1735_v17, %v1734_v42  ;;  %v1740_v28 = vshll.u32 %v2779_v9, %v1731_v19 }
 0x3b4   : > { %v3674_v49 = vmul.u32.u64.low %v3641_v7, %v1972_v24  ;;  %v3675_v30 = vmul.u32.u64.high %v3641_v7, %v1972_v24, %v3674_v49  ;;  %v3678_v22 = vmul.u32.u64.low %v3641_v7, %v1968_v32  ;;  %v3679_v45 = vmul.u32.u64.high %v3641_v7, %v1968_v32, %v3678_v22 }
 0x3b5   : > { %v1739_v47 = vor.u32 %v1738_v44, %v1737_v63  ;;  %v1741_v53 = vshrl.u32 %v2780_v11, %v1732_v46  ;;  %v1733_v40 = vshrl.u32 %v2777_v4, %v1732_v46  ;;  %v1743_v37 = vshll.u32 %v2780_v11, %v1731_v19 }
 0x3b6   : > { %v1744_v23 = vshrl.u32 %v2781_v13, %v1732_v46  ;;  %v1747_v29 = vshrl.u32 %v2782_v20, %v1732_v46  ;;  %v1980_v8 = vmul.u32 %v3641_v7, %v1964_v39  ;;  %v1746_v59 = vshll.u32 %v2781_v13, %v1731_v19 }
 0x3b7   : > { %v1742_v35 = vor.u32 %v1741_v53, %v1740_v28  ;;  %vm1749_vm6 = vcmp.lt.s32.totalorder %v3650_v50, 1  ;;  %vm1982_vm7 = vc.u32 %v3675_v30, %v3678_v22  ;;  %v1983_v52 = vadd.s32 1, %v3679_v45 }
 0x3b8   : > { %v1745_v10 = vor.u32 %v1744_v23, %v1743_v37  ;;  %vm1750_vm8 = vcmp.lt.s32.totalorder %v3650_v50, 2  ;;  %v1748_v16 = vor.u32 %v1747_v29, %v1746_v59  ;;  %vm1751_vm9 = vcmp.lt.s32.totalorder %v3650_v50, 3 }
 0x3b9   : > { %vm1752_vm10 = vcmp.lt.s32.totalorder %v3650_v50, 4  ;;  %v1757_v1 = vsel %vm1749_vm6, %v1736_v57, %v1739_v47  ;;  %v1984_v7 = vsel %vm1982_vm7, %v1983_v52, %v3679_v45  ;;  %v1761_v38 = vsel %vm1749_vm6, %v1739_v47, %v1742_v35 }
 0x3ba   : > { %v1754_v51 = vsel %vm1752_vm10, %v1742_v35, 2102212464  ;;  %v1758_v19 = vsel %vm1752_vm10, %v1745_v10, 920167782  ;;  %v1985_v27 = vadd.s32 %v1984_v7, %v1980_v8  ;;  %v1753_v55 = vsel %vm1749_vm6, %v1733_v40, %v1736_v57 }
 0x3bb   : > { %v1759_v33 = vsel %vm1751_vm9, %v1742_v35, %v1758_v19  ;;  %v1762_v54 = vsel %vm1752_vm10, %v1748_v16, 1326507024  ;;  %v1755_v56 = vsel %vm1751_vm9, %v1739_v47, %v1754_v51  ;;  %v2041_v12 = vsel %vm2040_vm5, %v3645_v15, 0 }
 0x3bc   : > { %v1760_v61 = vsel %vm1750_vm8, %v1757_v1, %v1759_v33  ;;  %v1763_v46 = vsel %vm1751_vm9, %v1745_v10, %v1762_v54  ;;  %v1986_v58 = vadd.s32 536870912, %v1985_v27  ;;  %v2029_v26 = vand.u32 2147483647, %v3632_v14 }
 0x3bd   : > { %v1764_v5 = vsel %vm1750_vm8, %v1761_v38, %v1763_v46  ;;  %v3706_v34 = vmul.u32.u64.low %v3643_v21, %v1760_v61  ;;  %v3707_v60 = vmul.u32.u64.high %v3643_v21, %v1760_v61, %v3706_v34  ;;  %v1756_v15 = vsel %vm1750_vm8, %v1753_v55, %v1755_v56 }
 0x3be   : > { %v3711_v0 = vmul.u32.u64.low %v3643_v21, %v1764_v5  ;;  %v3712_v41 = vmul.u32.u64.high %v3643_v21, %v1764_v5, %v3711_v0  ;;  %v3715_v43 = vshrl.u32 %v1986_v58, 30  ;;  %v2043_v42 = vand.u32 31, %v2041_v12 }
 0x3bf   : > { %v1824_v31 = vand.u32 2139095040, %v3647_v3  ;;  %v1775_v17 = vadd.s32 1, %v3707_v60  ;;  %v1772_v39 = vmul.u32 %v3643_v21, %v1756_v15  ;;  %v2036_v24 = vand.u32 8388607, %v2029_v26 }
 0x3c0   : > { %v1988_v18 = vshll.u32 %v3715_v43, 30  ;;  %v2044_v63 = vsub.s32 32, %v2043_v42  ;;  %vm1774_vm12 = vc.u32 %v3712_v41, %v3706_v34  ;;  %v2046_v49 = vshll.u32 %v2777_v4, %v2043_v42 }
 0x3c1   : > { %v1776_v32 = vsel %vm1774_vm12, %v1775_v17, %v3707_v60  ;;  %v1825_v50 = vshrl.u32 %v1824_v31, 23  ;;  %v2049_v21 = vshll.u32 %v2778_v6, %v2043_v42  ;;  %v2052_v28 = vshll.u32 %v2779_v9, %v2043_v42 }
 0x3c2   : > { %v1777_v44 = vadd.s32 %v1776_v32, %v1772_v39  ;;  %v2047_v45 = vshrl.u32 %v2778_v6, %v2044_v63  ;;  %v2050_v57 = vshrl.u32 %v2779_v9, %v2044_v63  ;;  %v3731_v47 = vsub.s32 %v1985_v27, %v1988_v18 }
 0x3c3   : > { %v2053_v53 = vshrl.u32 %v2780_v11, %v2044_v63  ;;  %v2042_v37 = vshrl.u32 %v2041_v12, 5  ;;  %v2055_v35 = vshll.u32 %v2780_v11, %v2043_v42  ;;  %v2056_v59 = vshrl.u32 %v2781_v13, %v2044_v63 }
 0x3c4   : > { %v1778_v40 = vadd.s32 536870912, %v1777_v44  ;;  %v2048_v23 = vor.u32 %v2047_v45, %v2046_v49  ;;  %v2051_v29 = vor.u32 %v2050_v57, %v2049_v21  ;;  %v2058_v10 = vshll.u32 %v2781_v13, %v2043_v42 }
 0x3c5   : > { %v2054_v8 = vor.u32 %v2053_v53, %v2052_v28  ;;  %v2059_v16 = vshrl.u32 %v2782_v20, %v2044_v63  ;;  %v2412_v1 = vadd.s32 4294967169, %v1825_v50  ;;  %v1991_v7 = vsub.s32 0, %v3731_v47 }
 0x3c6   : > { %v3738_v52 = vshrl.u32 %v1778_v40, 30  ;;  %v2037_v51 = vor.u32 8388608, %v2036_v24  ;;  %v2057_v19 = vor.u32 %v2056_v59, %v2055_v35  ;;  %vm2061_vm13 = vcmp.lt.s32.totalorder %v2042_v37, 1 }
 0x3c7   : > { %v2060_v27 = vor.u32 %v2059_v16, %v2058_v10  ;;  %vm2064_vm14 = vcmp.lt.s32.totalorder %v2042_v37, 4  ;;  %vm2063_vm15 = vcmp.lt.s32.totalorder %v2042_v37, 3  ;;  %v2069_v55 = vsel %vm2061_vm13, %v2048_v23, %v2051_v29 }
 0x3c8   : > { %v1780_v38 = vshll.u32 %v3738_v52, 30  ;;  %v2070_v33 = vsel %vm2064_vm14, %v2057_v19, 920167782  ;;  %v2073_v54 = vsel %vm2061_vm13, %v2051_v29, %v2054_v8  ;;  %vm2062_vm0 = vcmp.lt.s32.totalorder %v2042_v37, 2 }
 0x3c9   : > { %v2071_v56 = vsel %vm2063_vm15, %v2054_v8, %v2070_v33  ;;  %v2074_v61 = vsel %vm2064_vm14, %v2060_v27, 1326507024  ;;  %v1831_v46 = vadd.s32 1, %v2412_v1  ;;  %v2417_v12 = vmin.u32 %v1991_v7, %v3731_v47 }
 0x3ca   : > { %v2045_v58 = vshrl.u32 %v2777_v4, %v2044_v63  ;;  %v2066_v5 = vsel %vm2064_vm14, %v2054_v8, 2102212464  ;;  %v2075_v60 = vsel %vm2063_vm15, %v2057_v19, %v2074_v61  ;;  %v3750_v0 = vsub.s32 %v1777_v44, %v1780_v38 }
 0x3cb   : > { %v2072_v15 = vsel %vm2062_vm0, %v2069_v55, %v2071_v56  ;;  %v2076_v42 = vsel %vm2062_vm0, %v2073_v54, %v2075_v60  ;;  %v2077_v31 = vshll.u32 %v2037_v51, 8  ;;  %v2067_v17 = vsel %vm2063_vm15, %v2051_v29, %v2066_v5 }
 0x3cc   : > { %v2065_v18 = vsel %vm2061_vm13, %v2045_v58, %v2048_v23  ;;  %vm1832_vm1 = vcmp.gt.s32.totalorder %v1831_v46, 0  ;;  %v1993_v24 = vclz %v2417_v12  ;;  %v1783_v44 = vsub.s32 0, %v3750_v0 }
 0x3cd   : > { %v3756_v39 = vmul.u32.u64.low %v2077_v31, %v2076_v42  ;;  %v3757_v32 = vmul.u32.u64.high %v2077_v31, %v2076_v42, %v3756_v39  ;;  %v3759_v63 = vmul.u32.u64.low %v2077_v31, %v2072_v15  ;;  %v3760_v50 = vmul.u32.u64.high %v2077_v31, %v2072_v15, %v3759_v63 }
 0x3ce   : > { %v1833_v49 = vsel %vm1832_vm1, %v1831_v46, 0  ;;  %v2068_v45 = vsel %vm2062_vm0, %v2065_v18, %v2067_v17  ;;  %v2418_v21 = vadd.s32 4294967294, %v1993_v24  ;;  %v2409_v53 = vmin.u32 %v1783_v44, %v3750_v0 }
 0x3cf   : > { %v1835_v57 = vand.u32 31, %v1833_v49  ;;  %vm2086_vm2 = vc.u32 %v3757_v32, %v3759_v63  ;;  %v2087_v28 = vadd.s32 1, %v3760_v50  ;;  %v2084_v40 = vmul.u32 %v2077_v31, %v2068_v45 }
 0x3d0   : > { %v1821_v29 = vand.u32 2147483647, %v3647_v3  ;;  %vm2419_vm3 = vcmp.lt.s32.totalorder %v2418_v21, 0  ;;  %v1785_v59 = vclz %v2409_v53  ;;  %v1834_v46 = vshrl.u32 %v1833_v49, 5 }
 0x3d1   : > { %v2088_v23 = vsel %vm2086_vm2, %v2087_v28, %v3760_v50  ;;  %v1836_v8 = vsub.s32 32, %v1835_v57  ;;  %v3775_v7 = vsel %vm2419_vm3, 0, %v2418_v21  ;;  %v1838_v27 = vshll.u32 %v2777_v4, %v1835_v57 }
 0x3d2   : > { %v2089_v35 = vadd.s32 %v2088_v23, %v2084_v40  ;;  %v1828_v10 = vand.u32 8388607, %v1821_v29  ;;  %v1841_v55 = vshll.u32 %v2778_v6, %v1835_v57  ;;  %v1847_v33 = vshll.u32 %v2780_v11, %v1835_v57 }
 0x3d3   : > { %v1839_v16 = vshrl.u32 %v2778_v6, %v1836_v8  ;;  %v1842_v1 = vshrl.u32 %v2779_v9, %v1836_v8  ;;  %v1845_v19 = vshrl.u32 %v2780_v11, %v1836_v8  ;;  %v1848_v38 = vshrl.u32 %v2781_v13, %v1836_v8 }
 0x3d4   : > { %v2090_v37 = vadd.s32 536870912, %v2089_v35  ;;  %v1851_v54 = vshrl.u32 %v2782_v20, %v1836_v8  ;;  %v2410_v56 = vadd.s32 4294967294, %v1785_v59  ;;  %v1844_v12 = vshll.u32 %v2779_v9, %v1835_v57 }
 0x3d5   : > { %v1840_v58 = vor.u32 %v1839_v16, %v1838_v27  ;;  %v1843_v5 = vor.u32 %v1842_v1, %v1841_v55  ;;  %v1849_v60 = vor.u32 %v1848_v38, %v1847_v33  ;;  %v1850_v15 = vshll.u32 %v2781_v13, %v1835_v57 }
 0x3d6   : > { %v3777_v51 = vshrl.u32 %v2090_v37, 30  ;;  %v1846_v31 = vor.u32 %v1845_v19, %v1844_v12  ;;  %v2001_v6 = vsub.s32 4294967266, %v3775_v7  ;;  %v1829_v18 = vor.u32 8388608, %v1828_v10 }
 0x3d7   : > { %v1852_v11 = vor.u32 %v1851_v54, %v1850_v15  ;;  %vm2411_vm4 = vcmp.lt.s32.totalorder %v2410_v56, 0  ;;  %vm1853_vm5 = vcmp.lt.s32.totalorder %v1834_v46, 1  ;;  %vm1856_vm6 = vcmp.lt.s32.totalorder %v1834_v46, 4 }
 0x3d8   : > { %v2092_v61 = vshll.u32 %v3777_v51, 30  ;;  %v1837_v17 = vshrl.u32 %v2777_v4, %v1836_v8  ;;  %vm1855_vm7 = vcmp.lt.s32.totalorder %v1834_v46, 3  ;;  %v1861_v9 = vsel %vm1853_vm5, %v1840_v58, %v1843_v5 }
 0x3d9   : > { %v1862_v39 = vsel %vm1856_vm6, %v1849_v60, 920167782  ;;  %vm1854_vm8 = vcmp.lt.s32.totalorder %v1834_v46, 2  ;;  %v1858_v24 = vsel %vm1856_vm6, %v1846_v31, 2102212464  ;;  %v1865_v49 = vsel %vm1853_vm5, %v1843_v5, %v1846_v31 }
 0x3da   : > { %v3788_v42 = vsub.s32 %v2089_v35, %v2092_v61  ;;  %v1863_v50 = vsel %vm1855_vm7, %v1846_v31, %v1862_v39  ;;  %v1866_v45 = vsel %vm1856_vm6, %v1852_v11, 1326507024  ;;  %v1869_v57 = vshll.u32 %v1829_v18, 8 }
 0x3db   : > { %v1864_v44 = vsel %vm1854_vm8, %v1861_v9, %v1863_v50  ;;  %v1788_v21 = vsel %vm2411_vm4, 0, %v2410_v56  ;;  %v1857_v4 = vsel %vm1853_vm5, %v1837_v17, %v1840_v58  ;;  %v1867_v53 = vsel %vm1855_vm7, %v1849_v60, %v1866_v45 }
 0x3dc   : > { %v2095_v20 = vsub.s32 0, %v3788_v42  ;;  %v1859_v40 = vsel %vm1855_vm7, %v1843_v5, %v1858_v24  ;;  %v1868_v23 = vsel %vm1854_vm8, %v1865_v49, %v1867_v53  ;;  %v1793_v16 = vsub.s32 4294967266, %v1788_v21 }
 0x3dd   : > { %v3800_v8 = vmul.u32.u64.low %v1869_v57, %v1864_v44  ;;  %v3801_v35 = vmul.u32.u64.high %v1869_v57, %v1864_v44, %v3800_v8  ;;  %v3804_v37 = vmul.u32.u64.low %v1869_v57, %v1868_v23  ;;  %v3805_v10 = vmul.u32.u64.high %v1869_v57, %v1868_v23, %v3804_v37 }
 0x3de   : > { %v2421_v13 = vmin.u32 %v2095_v20, %v3788_v42  ;;  %v1860_v1 = vsel %vm1854_vm8, %v1857_v4, %v1859_v40  ;;  %v2002_v19 = vadd.s32 127, %v2001_v6  ;;  %v1997_v55 = vsub.s32 32, %v3775_v7 }
 0x3df   : > { %v1879_v27 = vadd.s32 1, %v3801_v35  ;;  %v1794_v56 = vadd.s32 127, %v1793_v16  ;;  %v2085_v61 = vadd.s32 %v3759_v63, %v3757_v32  ;;  %v1876_v12 = vmul.u32 %v1869_v57, %v1860_v1 }
 0x3e0   : > { %v2097_v28 = vclz %v2421_v13  ;;  %vm1878_vm10 = vc.u32 %v3805_v10, %v3800_v8  ;;  %v1981_v46 = vadd.s32 %v3678_v22, %v3675_v30  ;;  %v2003_v60 = vshll.u32 %v2002_v19, 23 }
 0x3e1   : > { %v1880_v5 = vsel %vm1878_vm10, %v1879_v27, %v3801_v35  ;;  %v1789_v15 = vsub.s32 32, %v1788_v21  ;;  %v1773_v11 = vadd.s32 %v3706_v34, %v3712_v41  ;;  %v1795_v32 = vshll.u32 %v1794_v56, 23 }
 0x3e2   : > { %v2422_v59 = vadd.s32 4294967294, %v2097_v28  ;;  %v1881_v6 = vadd.s32 %v1880_v5, %v1876_v12  ;;  %v1999_v18 = vshrl.u32 %v1981_v46, %v1997_v55  ;;  %v1998_v9 = vshll.u32 %v3731_v47, %v3775_v7 }
 0x3e3   : > { %vm2784_vm12 = vmmov 0   ;;  %v2004_v22 = vor.u32 4788187, %v2003_v60  ;;  %v1791_v39 = vshrl.u32 %v1773_v11, %v1789_v15  ;;  %v1796_v24 = vor.u32 4788187, %v1795_v32 }
 0x3e4   : > { %vm2423_vm9 = vcmp.lt.s32.totalorder %v2422_v59, 0  ;;  %v1882_v17 = vadd.s32 536870912, %v1881_v6  ;;  %2516 = vmatprep.mubr.msk.bf16.mxu0 %vm2784_vm12, %v2783_v62  ;;  %2524 = vmatprep.mubr.msk.bf16.mxu1 %vm2784_vm12, %v2783_v62  ;;  %v2000_v41 = vor.u32 %v1999_v18, %v1998_v9  ;;  %vm2031_vm13 = vcmp.lt.s32.totalorder %v3632_v14, 0 }
 0x3e5   : > { %v2100_v38 = vsel %vm2423_vm9, 0, %v2422_v59  ;;  %v2005_v7 = vand.u32 2147483647, %v2004_v22  ;;  %v1797_v28 = vand.u32 2147483647, %v1796_v24  ;;  %vm1927_vm15 = vcmp.lt.s32.totalorder %v3626_v2, 0 }
 0x3e6   : > { %v2101_v33 = vsub.s32 32, %v2100_v38  ;;  %v2105_v54 = vsub.s32 4294967266, %v2100_v38  ;;  %v2102_v63 = vshll.u32 %v3788_v42, %v2100_v38  ;;  %v3826_v34 = vshrl.u32 %v1882_v17, 30 }
 0x3e7   : > { %v1790_v42 = vshll.u32 %v3750_v0, %v1788_v21  ;;  %v2007_v57 = vcvt.s32.f32 %v2000_v41  ;;  %vm3836_vm0 = vcmp.le.f32.partialorder %v2029_v26, 0.7853982  ;;  %vm3846_vm1 = vcmp.le.f32.partialorder %v1925_v25, 0.7853982 }
 0x3e8   : > { %v2106_v58 = vadd.s32 127, %v2105_v54  ;;  %v2103_v31 = vshrl.u32 %v2085_v61, %v2101_v33  ;;  %v1884_v47 = vshll.u32 %v3826_v34, 30  ;;  %v1877_v33 = vadd.s32 %v3800_v8, %v3805_v10 }
 0x3e9   : > { %v1792_v44 = vor.u32 %v1791_v39, %v1790_v42  ;;  %v2008_v40 = vmul.f32 %v2007_v57, %v2005_v7  ;;  %vm1719_vm2 = vcmp.lt.s32.totalorder %v3628_v48, 0  ;;  %v2115_v25 = vsub.s32 4, %v3777_v51 }
 0x3ea   : > { %v2107_v20 = vshll.u32 %v2106_v58, 23  ;;  %v2104_v13 = vor.u32 %v2103_v31, %v2102_v63  ;;  %v1885_v45 = vsub.s32 %v1881_v6, %v1884_v47  ;;  %vm3862_vm3 = vcmp.le.f32.partialorder %v1717_v36, 0.7853982 }
 0x3eb   : > { %v1799_v23 = vcvt.s32.f32 %v1792_v44  ;;  %v2009_v1 = vxor.u32 2147483648, %v2008_v40  ;;  %v2011_v31 = vsub.s32 4, %v3715_v43  ;;  %v1803_v11 = vsub.s32 4, %v3738_v52 }
 0x3ec   : > { %v2108_v30 = vor.u32 4788187, %v2107_v20  ;;  %v2111_v49 = vcvt.s32.f32 %v2104_v13  ;;  %v1887_v53 = vsub.s32 0, %v1885_v45  ;;  %v2116_v36 = vsel %vm2031_vm13, %v2115_v25, %v3777_v51 }
 0x3ed   : > { %v1800_v59 = vmul.f32 %v1799_v23, %v1797_v28  ;;  %v2010_v55 = vsel %vm1927_vm15, %v2009_v1, %v2008_v40  ;;  %v2012_v63 = vsel %vm1927_vm15, %v2011_v31, %v3715_v43  ;;  %v2118_v17 = vsel %vm3836_vm0, 0, %v2116_v36 }
 0x3ee   : > { %v2109_v50 = vand.u32 2147483647, %v2108_v30  ;;  %v2413_v35 = vmin.u32 %v1887_v53, %v1885_v45  ;;  %v2013_v10 = vsel %vm3846_vm1, %v3626_v2, %v2010_v55  ;;  %v1907_v30 = vsub.s32 4, %v3826_v34 }
 0x3ef   : > { %v1801_v21 = vxor.u32 2147483648, %v1800_v59  ;;  %v1804_v22 = vsel %vm1719_vm2, %v1803_v11, %v3738_v52  ;;  %v2014_v51 = vsel %vm3846_vm1, 0, %v2012_v63  ;;  %v2122_v13 = vadd.s32 3, %v2118_v17 }
 0x3f0   : > { %v2112_v4 = vmul.f32 %v2111_v49, %v2109_v50  ;;  %v1889_v16 = vclz %v2413_v35  ;;  %vm1823_vm4 = vcmp.lt.s32.totalorder %v3647_v3, 0  ;;  %v1806_v43 = vsel %vm3862_vm3, 0, %v1804_v22 }
 0x3f1   : > { %v1802_v12 = vsel %vm1719_vm2, %v1801_v21, %v1800_v59  ;;  %vm3890_vm5 = vcmp.le.f32.partialorder %v1821_v29, 0.7853982  ;;  %v1908_v52 = vsel %vm1823_vm4, %v1907_v30, %v3826_v34  ;;  %v2018_v47 = vadd.s32 3, %v2014_v51 }
 0x3f2   : > { %v2113_v37 = vxor.u32 2147483648, %v2112_v4  ;;  %v2414_v0 = vadd.s32 4294967294, %v1889_v16  ;;  %v1805_v6 = vsel %vm3862_vm3, %v3628_v48, %v1802_v12  ;;  %v1910_v57 = vsel %vm3890_vm5, 0, %v1908_v52 }
 0x3f3   : > { %v2123_v29 = vand.u32 3, %v2122_v13  ;;  %v2019_v34 = vand.u32 3, %v2018_v47  ;;  %v1914_v23 = vadd.s32 3, %v1910_v57 }
 0x3f4   : > { %v2114_v19 = vsel %vm2031_vm13, %v2113_v37, %v2112_v4  ;;  %vm2415_vm14 = vcmp.lt.s32.totalorder %v2414_v0, 0 }
 0x3f5   : > { %v1892_v27 = vsel %vm2415_vm14, 0, %v2414_v0  ;;  %v2117_v26 = vsel %vm3836_vm0, %v3632_v14, %v2114_v19  ;;  %vm2125_vm6 = vcmp.eq.s32.totalorder %v2123_v29, 0  ;;  %vm2128_vm7 = vcmp.eq.s32.totalorder %v2123_v29, 2 }
 0x3f6   : > { %v1893_v54 = vsub.s32 32, %v1892_v27  ;;  %v1897_v56 = vsub.s32 4294967266, %v1892_v27  ;;  %v1894_v46 = vshll.u32 %v1885_v45, %v1892_v27  ;;  %2694 = vcosq.f32 %v2117_v26 }
 0x3f7   : > { %2696 = vsinq.f32 %v2117_v26  ;;  %v1810_v45 = vadd.s32 3, %v1806_v43  ;;  %vm2021_vm8 = vcmp.eq.s32.totalorder %v2019_v34, 0  ;;  %vm2024_vm9 = vcmp.eq.s32.totalorder %v2019_v34, 2 }
 0x3f8   : > { %v1895_v58 = vshrl.u32 %v1877_v33, %v1893_v54  ;;  %v1898_v8 = vadd.s32 127, %v1897_v56  ;;  %2698 = vcosq.f32 %v2013_v10  ;;  %v1915_v19 = vand.u32 3, %v1914_v23 }
 0x3f9   : > { %2700 = vsinq.f32 %v2013_v10  ;;  %v1811_v37 = vand.u32 3, %v1810_v45  ;;  %vm2124_vm10 = vcmp.lt.s32.totalorder %v2123_v29, 2  ;;  %vm2020_vm15 = vcmp.lt.s32.totalorder %v2019_v34, 2  ;;  %v2281_v45 = vpop.permute.xlu1 %2280 }
 0x3fa   : > { %v1896_v60 = vor.u32 %v1895_v58, %v1894_v46  ;;  %v1899_v15 = vshll.u32 %v1898_v8, 23  ;;  %2702 = vcosq.f32 %v1805_v6  ;;  %vm2121_vm0 = vweird.f32 %v3632_v14 }
 0x3fb   : > { %2704 = vsinq.f32 %v1805_v6  ;;  %vm1813_vm13 = vcmp.eq.s32.totalorder %v1811_v37, 0  ;;  %vm1816_vm14 = vcmp.eq.s32.totalorder %v1811_v37, 2  ;;  %vm1812_vm1 = vcmp.lt.s32.totalorder %v1811_v37, 2 }
 0x3fc   : > { %v1900_v18 = vor.u32 4788187, %v1899_v15  ;;  %v1903_v32 = vcvt.s32.f32 %v1896_v60  ;;  %vm1920_vm2 = vcmp.eq.s32.totalorder %v1915_v19, 2  ;;  %vm1917_vm3 = vcmp.eq.s32.totalorder %v1915_v19, 0 }
 0x3fe   : > { %v1901_v20 = vand.u32 2147483647, %v1900_v18 }
 0x400   : > { %v1904_v9 = vmul.f32 %v1903_v32, %v1901_v20  ;;  %v2695_v41 = vpop.eup %2694 }
 0x401   : > { %v2697_v50 = vpop.eup %2696  ;;  %v2129_v53 = vxor.u32 2147483648, %v2695_v41 }
 0x402   : > { %v1905_v39 = vxor.u32 2147483648, %v1904_v9  ;;  %v2699_v44 = vpop.eup %2698  ;;  %v2126_v4 = vxor.u32 2147483648, %v2697_v50 }
 0x403   : > { %v2701_v49 = vpop.eup %2700  ;;  %v2025_v59 = vxor.u32 2147483648, %v2699_v44  ;;  %v2130_v21 = vsel %vm2128_vm7, %v2129_v53, %v2697_v50  ;;  %vm1913_vm7 = vweird.f32 %v3647_v3 }
 0x404   : > { %v1906_v24 = vsel %vm1823_vm4, %v1905_v39, %v1904_v9  ;;  %v2703_v28 = vpop.eup %2702  ;;  %v2022_v35 = vxor.u32 2147483648, %v2701_v49  ;;  %v2127_v0 = vsel %vm2125_vm6, %v2695_v41, %v2126_v4  ;;  %vm2017_vm4 = vweird.f32 %v3626_v2  ;;  %v2133_v2 = vld [vmem:[%s3970_s7] sm:$0xf] }
 0x405   : > { %v1909_v7 = vsel %vm3890_vm5, %v3647_v3, %v1906_v24  ;;  %v2705_v40 = vpop.eup %2704  ;;  %v1817_v1 = vxor.u32 2147483648, %v2703_v28  ;;  %v2026_v27 = vsel %vm2024_vm9, %v2025_v59, %v2701_v49  ;;  %v2131_v55 = vsel %vm2124_vm10, %v2127_v0, %v2130_v21 }
 0x406   : > { %2706 = vcosq.f32 %v1909_v7  ;;  %v1814_v16 = vxor.u32 2147483648, %v2705_v40  ;;  %v2023_v38 = vsel %vm2021_vm8, %v2699_v44, %v2022_v35  ;;  %v2132_v58 = vsel %vm2121_vm0, nan, %v2131_v55 }
 0x407   : > { %2708 = vsinq.f32 %v1909_v7  ;;  %v1818_v56 = vsel %vm1816_vm14, %v1817_v1, %v2705_v40  ;;  %v2027_v12 = vsel %vm2020_vm15, %v2023_v38, %v2026_v27  ;;  %vm1916_vm5 = vcmp.lt.s32.totalorder %v1915_v19, 2 }
 0x408   : > { %v1815_v54 = vsel %vm1813_vm13, %v2703_v28, %v1814_v16  ;;  %v2028_v5 = vsel %vm2017_vm4, nan, %v2027_v12  ;;  %vm1809_vm6 = vweird.f32 %v3628_v48  ;;  %v2135_v63 = vpack.c.bf16 %v2133_v2, %v2133_v2 }
 0x409   : > { %v1819_v8 = vsel %vm1812_vm1, %v1815_v54, %v1818_v56  ;;  %v2140_v15 = vpack.c.bf16 %v2132_v58, %v2028_v5 }
 0x40a   : > { %v1820_v31 = vsel %vm1809_vm6, nan, %v1819_v8  ;;  %v2136_v22 = vunpack.c.l.bf16 %v2135_v63 }
 0x40b   : > { %v2143_v36 = vunpack.c.l.bf16 %v2140_v15  ;;  %v2144_v20 = vunpack.c.h.bf16 %v2140_v15 }
 0x40c   : > { %v2137_v51 = vsub.f32 %v2133_v2, %v2136_v22 }
 0x40d   : > { %v2147_v17 = vsub.f32 %v2028_v5, %v2143_v36  ;;  %v2148_v9 = vsub.f32 %v2132_v58, %v2144_v20 }
 0x40e   : > { %v2138_v39 = vpack.c.bf16 %v2137_v51, %v2137_v51 }
 0x40f   : > { %v2150_v30 = vpack.c.bf16 %v2148_v9, %v2147_v17 }
 0x410   : > { %v2707_v33 = vpop.eup %2706 }
 0x411   : > { %v2709_v61 = vpop.eup %2708  ;;  %v1921_v26 = vxor.u32 2147483648, %v2707_v33 }
 0x412   : > { %v1918_v46 = vxor.u32 2147483648, %v2709_v61 }
 0x413   : > { %v1922_v10 = vsel %vm1920_vm2, %v1921_v26, %v2709_v61 }
 0x414   : > { %v1919_v25 = vsel %vm1917_vm3, %v2707_v33, %v1918_v46 }
 0x415   : > { %v1923_v60 = vsel %vm1916_vm5, %v1919_v25, %v1922_v10 }
 0x416   : > { %v1924_v14 = vsel %vm1913_vm7, nan, %v1923_v60 }
 0x417   : > { %v2139_v6 = vpack.c.bf16 %v1924_v14, %v1820_v31 }
 0x419   : > { %2521 = vmatpush3.bf16.msra.mxu1 %v2139_v6  ;;  %v2141_v18 = vunpack.c.l.bf16 %v2139_v6  ;;  %v2142_v11 = vunpack.c.h.bf16 %v2139_v6 }
 0x41a   : > { %2522 = vmatprep.subr.bf16.mxu1 %v2783_v62 }
 0x41b   : > { %v2145_v32 = vsub.f32 %v1820_v31, %v2141_v18  ;;  %v2146_v48 = vsub.f32 %v1924_v14, %v2142_v11 }
 0x41d   : > { %2523 = vmatpush3.bf16.msra.mxu1 %v2140_v15  ;;  %v2149_v3 = vpack.c.bf16 %v2146_v48, %v2145_v32 }
 0x41f   : > { %2513 = vmatpush3.bf16.msra.mxu0 %v2149_v3 }
 0x420   : > { %2514 = vmatprep.subr.bf16.mxu0 %v2783_v62  ;;  %2525 = vmatmul.mubr.msk.bf16.vlgmr.msra.gmra.mrb[4].mxu1 %vm894_vm11, %v2135_v63 }
 0x423   : > { %2515 = vmatpush3.bf16.msra.mxu0 %v2150_v30 }
 0x424   : > { %2528 = vmatprep.subr.bf16.mxu0 %v2783_v62 }
 0x426   : > { %2517 = vmatmul.mubr.msk.bf16.vlgmr.msra.gmra.mrb[4].mxu0 %vm894_vm11, %v2135_v63 }
 0x427   : > { %2529 = vmatpush3.bf16.msra.mxu0 %v2139_v6  ;;  %2532 = vmatprep.mubr.msk.bf16.mxu0 %vm2784_vm12, %v2783_v62 }
 0x428   : > { %2530 = vmatprep.subr.bf16.mxu0 %v2783_v62 }
 0x42b   : > { %2531 = vmatpush3.bf16.msra.mxu0 %v2140_v15 }
 0x42e   : > { %2533 = vmatmul.mubr.msk.bf16.vlgmr.msra.gmra.mrb[8].mxu0 %vm894_vm11, %v2138_v39 }
 0x4f3   : > { %v2228_v13 = vpop.f32.mrb[4].mxu1 }
 0x4f4   : > { %v2526_v41 = vpop.f32.mrb[5].mxu1 }
 0x4f5   : > { %v2231_v43 = vpop.f32.mrb[6].mxu1 }
 0x4f6   : > { %v2527_v42 = vpop.f32.mrb[7].mxu1 }
 0x4f9   : > { %v2188_v24 = vpop.f32.mrb[4].mxu0 }
 0x4fa   : > { %v2518_v52 = vpop.f32.mrb[5].mxu0  ;;  %v2229_v50 = vadd.f32 %v2228_v13, %v2188_v24 }
 0x4fb   : > { %v2191_v47 = vpop.f32.mrb[6].mxu0 }
 0x4fc   : > { %v2519_v7 = vpop.f32.mrb[7].mxu0 }
 0x501   : > { %v2271_v44 = vpop.f32.mrb[8].mxu0 }
 0x502   : > { %v2277_v62 = vadd.f32 %v2271_v44, %v2229_v50  ;;  %v2534_v49 = vpop.f32.mrb[9].mxu0 }
 0x503   : > { %v2274_v57 = vpop.f32.mrb[10].mxu0 }
 0x504   : > { %v2283_v29 = vadd.f32 %v2281_v45, %v2277_v62  ;;  %v2535_v28 = vpop.f32.mrb[11].mxu0 }
 0x506   : > { %2284 = vst [vmem:[%s323_s21] sm:$0xf] %v2283_v29 }
 0x507   : > { %2723 = shalt.err (!%p2720_p3)
}
 0x508   : > { %s2724_s14 = scalar_lea.hbm %s3921_s25, 64  ;;  %s2728_s21 = scalar_lea.hbm %s3972_s9, 128 }
 0x509   : > { %p2725_p4 = scmp.ne.s32.totalorder %s3921_s25, %s2724_s14  ;;  %p2729_p9 = scmp.lt.u32.totalorder %s3921_s25, %s3972_s9 }
 0x50a   : > { %p2730_p10 = scmp.lt.u32.totalorder %s2728_s21, %s2724_s14  ;;  %p2732_p12 = scmp.lt.u32.totalorder %s2724_s14, %s3921_s25 }
 0x50b   : > { %p2726_p7 = pnand %p2725_p4, %p2874_p5 }
 0x50c   : > { %p2731_p11 = por %p2730_p10, %p2729_p9 }
 0x50d   : > { %p2727_p8 = pneg %p2726_p7 }
 0x50e   : > { %p2733_p13 = por %p2732_p12, %p2731_p11 }
 0x510   : > { %p2734_p0 = pnand %p2733_p13, %p2727_p8 }
 0x512   : > { %2737 = shalt.err (!%p2734_p0)
}
 0x513   : > { %2600 = dma.vmem_to_hbm [thread:$0]  (%p2874_p5), %s3923_s22, 64, %s3921_s25, %s2286_s13  }
 0x514 PF: > { %p2606_p1 = scmp.ge.s32.totalorder %s2772_s12, 2  ;;  %s2311_s26 = sand.u32 1, %s2760_s30  }
 0x515   : > { %s2312_s27 = scalar_lea.sflag [#allocation3], %s2311_s26 }
 0x516   : > { %p2603_p2 = pnand %p2606_p1, %p2878_p6 }
 0x518   : > { %2755 = dma.done.wait (!%p2603_p2), %s2312_s27, 64  }
 0x519   : > { %2757 = vsyncadd (!%p2603_p2), %s2312_s27, 4294967232  ;;  %p19_p3 = scmp.ge.s32.totalorder %s2861_s15, 4   ;;  %s3997_s30 = smov %s2764_s10 }
 0x51a   : > { %s3998_s10 = smov %s2768_s11  ;;  %s3999_s11 = smov %s2872_s18 }
 0x51b   : > { %s4000_s12 = smov %s2861_s15  ;;  %21 = sbr.rel (!%p19_p3) target bundleno = 3 (0x3), region = 91 }
 0x522   :  { %2317 = vsyncpa [#allocation3], 1 }
 0x523   :  { %2319 = vsyncpa [#allocation3 + $0x1], 1 }

</bundles_post_ra>
